<compile_context>
chip_gen: v7x
topology: tpu7x:2x2x1
jax: 0.10.0
libtpu: 0.0.40
codegen_flags: <defaults>
</compile_context>

<pallas_src>
import functools

import jax
import jax.numpy as jnp
from jax.experimental import pallas as pl
from jax.experimental.pallas import tpu as pltpu


# ----------------------------- model config ---------------------------------
POS_DIM = 63          # positional encoding dim (PyTorch default)
HIDDEN_DIM = 32       # small hidden dim for the synthetic test
N_LAYERS = 8          # number of hidden Linear layers
N_RAYS = 4096         # batch of rays -> 8 grid steps (>=4 per TC on v7x)
TILE_N = 512          # rays (columns) per grid step; sweep 512-2048 in prod


# ------------------------------- kernel -------------------------------------
def nerf_mlp_kernel(x_ref, w0_ref, b0_ref, wh_ref, bh_ref,
                    whead_ref, bhead_ref, out_ref, *, n_hidden_layers, half):
    # x_ref: (TILE_N, pos_dim) in compute dtype (f32 or bf16).
    # Weights are torch layout (out_features, in_features) in compute dtype;
    # biases are (out_features, 1) f32.  Activations are feature-major
    # (hidden, half) so the large ray dim sits on the lane axis.
    cdt = w0_ref.dtype

    def first_layer(x_blk):
        # (H, K) x (half, K)^T -> (H, half); transpose folded into the matmul.
        z = jax.lax.dot_general(
            w0_ref[...], x_blk,
            dimension_numbers=(((1,), (1,)), ((), ())),
            preferred_element_type=jnp.float32) + b0_ref[...]
        return jnp.maximum(z, 0.0).astype(cdt)

    def hidden_layer(i, h):
        z = jax.lax.dot_general(
            wh_ref[i], h,
            dimension_numbers=(((1,), (0,)), ((), ())),
            preferred_element_type=jnp.float32) + bh_ref[i]
        return jnp.maximum(z, 0.0).astype(cdt)

    def head(h):
        # Merged head: rows 0..2 = rgb (sigmoid), row 3 = sigma, rows 4..7 pad.
        z = jax.lax.dot_general(
            whead_ref[...], h,
            dimension_numbers=(((1,), (0,)), ((), ())),
            preferred_element_type=jnp.float32) + bhead_ref[...]
        row = jax.lax.broadcasted_iota(jnp.int32, z.shape, 0)
        return jnp.where(row < 3, jax.nn.sigmoid(z), z)

    # Two independent column streams -> interleaved matmuls keep the MXU fed
    # across the serial 9-layer dependency chain.
    xa = x_ref[pl.ds(0, half), :]
    xb = x_ref[pl.ds(half, half), :]
    ha = first_layer(xa)
    hb = first_layer(xb)
    for i in range(n_hidden_layers):
        ha = hidden_layer(i, ha)
        hb = hidden_layer(i, hb)
    out_ref[:, pl.ds(0, half)] = head(ha).astype(out_ref.dtype)
    out_ref[:, pl.ds(half, half)] = head(hb).astype(out_ref.dtype)


# ------------------------------- wrapper -------------------------------------
def nerf_mlp_pallas(x, params, *, tile_n=TILE_N, compute_dtype=jnp.float32):
    """x: (N, pos_dim) f32.  Returns (N, 4) f32 = [rgb(3, sigmoid), sigma(1)]."""
    w0, b0, wh, bh, w_head, b_head = params
    n, pos_dim = x.shape
    hidden = w0.shape[0]
    n_hidden = wh.shape[0]

    assert tile_n % 256 == 0, "tile_n must split into two lane-aligned halves"
    n_pad = pl.cdiv(n, tile_n) * tile_n
    if n_pad != n:
        # Rare ragged case only; the common path streams x with zero copies.
        x = jnp.pad(x, ((0, n_pad - n), (0, 0)))

    # Pad the merged head 4 -> 8 rows so the output tile is a full (8, tile_n)
    # store (no masked vst epilogue); extra rows are zeros and sliced off.
    w_head_p = jnp.zeros((8, hidden), w_head.dtype).at[:4].set(w_head)
    b_head_p = jnp.zeros((8, 1), b_head.dtype).at[:4].set(b_head)

    # bf16 variant: MXU-native inputs, f32 accumulate; biases stay f32.
    x_c = x.astype(compute_dtype)
    w0_c = w0.astype(compute_dtype)
    wh_c = wh.astype(compute_dtype)
    w_head_c = w_head_p.astype(compute_dtype)

    grid = (n_pad // tile_n,)

    def full_spec(shape):
        zeros = (0,) * len(shape)
        return pl.BlockSpec(shape, lambda i: zeros)

    kernel = functools.partial(
        nerf_mlp_kernel, n_hidden_layers=n_hidden, half=tile_n // 2)

    out = pl.pallas_call(
        kernel,
        out_shape=jax.ShapeDtypeStruct((8, n_pad), jnp.float32),
        grid_spec=pl.GridSpec(
            grid=grid,
            in_specs=[
                pl.BlockSpec((tile_n, pos_dim), lambda i: (i, 0)),  # x tile
                full_spec(w0_c.shape),      # (hidden, pos_dim)
                full_spec(b0.shape),        # (hidden, 1) f32
                full_spec(wh_c.shape),      # (n_hidden, hidden, hidden)
                full_spec(bh.shape),        # (n_hidden, hidden, 1) f32
                full_spec(w_head_c.shape),  # (8, hidden)
                full_spec(b_head_p.shape),  # (8, 1) f32
            ],
            out_specs=pl.BlockSpec((8, tile_n), lambda i: (0, i)),
        ),
        compiler_params=pltpu.CompilerParams(
            dimension_semantics=("parallel",)),
    )(x_c, w0_c, b0, wh_c, bh, w_head_c, b_head_p)

    # Back to (N, 4) row-major for the caller (cheap: 4 x N array).
    return out[:4, :n].T


# ---------------------- deterministic parameter init ------------------------
def init_params(key, pos_dim, hidden, n_layers):
    """Mimics torch.nn.Linear default init: U(-1/sqrt(fan_in), 1/sqrt(fan_in)).

    Weights are kept in torch layout (out_features, in_features), biases as
    (out_features, 1).  The rgb and sigma heads are merged into a single
    (4, hidden) weight with rows [rgb0, rgb1, rgb2, sigma] so the kernel emits
    torch.cat([sigmoid(rgb), sigma], dim=-1) directly.
    """
    keys = jax.random.split(key, 2 * (n_layers + 2))
    k = iter(keys)

    def linear(in_dim, out_dim):
        bound = 1.0 / jnp.sqrt(jnp.float32(in_dim))
        w = jax.random.uniform(next(k), (out_dim, in_dim),
                               minval=-bound, maxval=bound, dtype=jnp.float32)
        b = jax.random.uniform(next(k), (out_dim, 1),
                               minval=-bound, maxval=bound, dtype=jnp.float32)
        return w, b

    w0, b0 = linear(pos_dim, hidden)
    whs, bhs = [], []
    for _ in range(n_layers - 1):
        w, b = linear(hidden, hidden)
        whs.append(w)
        bhs.append(b)
    wh = jnp.stack(whs, axis=0)                      # (n_layers-1, H, H)
    bh = jnp.stack(bhs, axis=0)                      # (n_layers-1, H, 1)
    ws, bs = linear(hidden, 1)                       # sigma head
    wr, br = linear(hidden, 3)                       # rgb head
    w_head = jnp.concatenate([wr, ws], axis=0)       # (4, H)
    b_head = jnp.concatenate([br, bs], axis=0)       # (4, 1)
    return (w0, b0, wh, bh, w_head, b_head)


# ----------------------------- pure-JAX reference ----------------------------
def nerf_mlp_ref(x, params):
    """Mathematically identical to the PyTorch forward (feature-major form)."""
    w0, b0, wh, bh, w_head, b_head = params
    h = jnp.maximum(jnp.dot(w0, x.T) + b0, 0.0)                 # (H, N)
    for i in range(wh.shape[0]):
        h = jnp.maximum(jnp.dot(wh[i], h) + bh[i], 0.0)
    z = jnp.dot(w_head, h) + b_head                             # (4, N)
    rgb = jax.nn.sigmoid(z[:3])
    sigma = z[3:]
    return jnp.concatenate([rgb, sigma], axis=0).T              # (N, 4)


# --------------------------------- main --------------------------------------
if __name__ == "__main__":
    key = jax.random.PRNGKey(0)
    k_x, k_p = jax.random.split(key)

    x = jax.random.normal(k_x, (N_RAYS, POS_DIM), dtype=jnp.float32)
    params = init_params(k_p, POS_DIM, HIDDEN_DIM, N_LAYERS)
    ref = nerf_mlp_ref(x, params)

    # f32 path (tight numeric check).
    out = jax.block_until_ready(nerf_mlp_pallas(x, params))
    assert out.shape == (N_RAYS, 4)
    assert jnp.allclose(out, ref, atol=1e-4, rtol=1e-4), "f32 mismatch vs reference"

    # bf16-input / f32-accumulate path (MXU-native, half the streamed HBM bytes).
    out_bf16 = jax.block_until_ready(
        nerf_mlp_pallas(x, params, compute_dtype=jnp.bfloat16))
    assert out_bf16.shape == (N_RAYS, 4)
    assert jnp.allclose(out_bf16, ref, atol=5e-2, rtol=5e-2), "bf16 mismatch vs reference"

    print("KERNEL_OK")
</pallas_src>

<mosaic_0001>
module attributes {stable_mosaic.version = 11 : i64} {
  func.func @nerf_mlp_kernel(%arg0: i32, %arg1: memref<512x63xf32, #tpu.memory_space<vmem>>, %arg2: memref<32x63xf32, #tpu.memory_space<vmem>>, %arg3: memref<32x1xf32, #tpu.memory_space<vmem>>, %arg4: memref<7x32x32xf32, #tpu.memory_space<vmem>>, %arg5: memref<7x32x1xf32, #tpu.memory_space<vmem>>, %arg6: memref<8x32xf32, #tpu.memory_space<vmem>>, %arg7: memref<8x1xf32, #tpu.memory_space<vmem>>, %arg8: memref<8x512xf32, #tpu.memory_space<vmem>>) attributes {dimension_semantics = [#tpu.dimension_semantics<parallel>], iteration_bounds = array<i64: 8>, scalar_prefetch = 0 : i64, scratch_operands = 0 : i64, tpu.core_type = #tpu.core_type<tc>, window_params = [{transform_indices = @transform_0, window_bounds = array<i64: 512, 63>}, {pipeline_mode = #tpu.pipeline_mode<synchronous>, transform_indices = @transform_1, window_bounds = array<i64: 32, 63>}, {pipeline_mode = #tpu.pipeline_mode<synchronous>, transform_indices = @transform_2, window_bounds = array<i64: 32, 1>}, {pipeline_mode = #tpu.pipeline_mode<synchronous>, transform_indices = @transform_3, window_bounds = array<i64: 7, 32, 32>}, {pipeline_mode = #tpu.pipeline_mode<synchronous>, transform_indices = @transform_4, window_bounds = array<i64: 7, 32, 1>}, {pipeline_mode = #tpu.pipeline_mode<synchronous>, transform_indices = @transform_5, window_bounds = array<i64: 8, 32>}, {pipeline_mode = #tpu.pipeline_mode<synchronous>, transform_indices = @transform_6, window_bounds = array<i64: 8, 1>}, {transform_indices = @transform_7, window_bounds = array<i64: 8, 512>}]} {
    %c0 = arith.constant 0 : index
    %c0_0 = arith.constant 0 : index
    %0 = vector.load %arg1[%c0, %c0_0] : memref<512x63xf32, #tpu.memory_space<vmem>>, vector<256x63xf32>
    %c256 = arith.constant 256 : index
    %c0_1 = arith.constant 0 : index
    %1 = vector.load %arg1[%c256, %c0_1] : memref<512x63xf32, #tpu.memory_space<vmem>>, vector<256x63xf32>
    %c0_2 = arith.constant 0 : index
    %c0_3 = arith.constant 0 : index
    %2 = vector.load %arg2[%c0_2, %c0_3] : memref<32x63xf32, #tpu.memory_space<vmem>>, vector<32x63xf32>
    %cst = arith.constant dense<0.000000e+00> : vector<32x256xf32>
    %3 = tpu.matmul %2, %0, %cst {dimension_numbers = #tpu.dot_dimension_numbers<[1], [1], [0], [0], [0, 0, 1, 0], [], []>} : vector<32x63xf32>, vector<256x63xf32>, vector<32x256xf32> -> vector<32x256xf32>
    %c0_4 = arith.constant 0 : index
    %c0_5 = arith.constant 0 : index
    %4 = vector.load %arg3[%c0_4, %c0_5] : memref<32x1xf32, #tpu.memory_space<vmem>>, vector<32x1xf32>
    %5 = vector.broadcast %4 : vector<32x1xf32> to vector<32x256xf32>
    %6 = arith.addf %3, %5 : vector<32x256xf32>
    %cst_6 = arith.constant 0.000000e+00 : f32
    %7 = vector.broadcast %cst_6 : f32 to vector<32x256xf32>
    %8 = arith.maximumf %6, %7 : vector<32x256xf32>
    %c0_7 = arith.constant 0 : index
    %c0_8 = arith.constant 0 : index
    %9 = vector.load %arg2[%c0_7, %c0_8] : memref<32x63xf32, #tpu.memory_space<vmem>>, vector<32x63xf32>
    %cst_9 = arith.constant dense<0.000000e+00> : vector<32x256xf32>
    %10 = tpu.matmul %9, %1, %cst_9 {dimension_numbers = #tpu.dot_dimension_numbers<[1], [1], [0], [0], [0, 0, 1, 0], [], []>} : vector<32x63xf32>, vector<256x63xf32>, vector<32x256xf32> -> vector<32x256xf32>
    %c0_10 = arith.constant 0 : index
    %c0_11 = arith.constant 0 : index
    %11 = vector.load %arg3[%c0_10, %c0_11] : memref<32x1xf32, #tpu.memory_space<vmem>>, vector<32x1xf32>
    %12 = vector.broadcast %11 : vector<32x1xf32> to vector<32x256xf32>
    %13 = arith.addf %10, %12 : vector<32x256xf32>
    %cst_12 = arith.constant 0.000000e+00 : f32
    %14 = vector.broadcast %cst_12 : f32 to vector<32x256xf32>
    %15 = arith.maximumf %13, %14 : vector<32x256xf32>
    %c0_13 = arith.constant 0 : index
    %c0_14 = arith.constant 0 : index
    %c0_15 = arith.constant 0 : index
    %16 = vector.load %arg4[%c0_13, %c0_14, %c0_15] : memref<7x32x32xf32, #tpu.memory_space<vmem>>, vector<1x32x32xf32>
    %17 = vector.shape_cast %16 : vector<1x32x32xf32> to vector<32x32xf32>
    %cst_16 = arith.constant dense<0.000000e+00> : vector<32x256xf32>
    %18 = tpu.matmul %17, %8, %cst_16 {dimension_numbers = #tpu.dot_dimension_numbers<[1], [0], [0], [1], [0, 0, 1, 1], [], []>} : vector<32x32xf32>, vector<32x256xf32>, vector<32x256xf32> -> vector<32x256xf32>
    %c0_17 = arith.constant 0 : index
    %c0_18 = arith.constant 0 : index
    %c0_19 = arith.constant 0 : index
    %19 = vector.load %arg5[%c0_17, %c0_18, %c0_19] : memref<7x32x1xf32, #tpu.memory_space<vmem>>, vector<1x32x1xf32>
    %20 = vector.shape_cast %19 : vector<1x32x1xf32> to vector<32x1xf32>
    %21 = vector.broadcast %20 : vector<32x1xf32> to vector<32x256xf32>
    %22 = arith.addf %18, %21 : vector<32x256xf32>
    %cst_20 = arith.constant 0.000000e+00 : f32
    %23 = vector.broadcast %cst_20 : f32 to vector<32x256xf32>
    %24 = arith.maximumf %22, %23 : vector<32x256xf32>
    %c0_21 = arith.constant 0 : index
    %c0_22 = arith.constant 0 : index
    %c0_23 = arith.constant 0 : index
    %25 = vector.load %arg4[%c0_21, %c0_22, %c0_23] : memref<7x32x32xf32, #tpu.memory_space<vmem>>, vector<1x32x32xf32>
    %26 = vector.shape_cast %25 : vector<1x32x32xf32> to vector<32x32xf32>
    %cst_24 = arith.constant dense<0.000000e+00> : vector<32x256xf32>
    %27 = tpu.matmul %26, %15, %cst_24 {dimension_numbers = #tpu.dot_dimension_numbers<[1], [0], [0], [1], [0, 0, 1, 1], [], []>} : vector<32x32xf32>, vector<32x256xf32>, vector<32x256xf32> -> vector<32x256xf32>
    %c0_25 = arith.constant 0 : index
    %c0_26 = arith.constant 0 : index
    %c0_27 = arith.constant 0 : index
    %28 = vector.load %arg5[%c0_25, %c0_26, %c0_27] : memref<7x32x1xf32, #tpu.memory_space<vmem>>, vector<1x32x1xf32>
    %29 = vector.shape_cast %28 : vector<1x32x1xf32> to vector<32x1xf32>
    %30 = vector.broadcast %29 : vector<32x1xf32> to vector<32x256xf32>
    %31 = arith.addf %27, %30 : vector<32x256xf32>
    %cst_28 = arith.constant 0.000000e+00 : f32
    %32 = vector.broadcast %cst_28 : f32 to vector<32x256xf32>
    %33 = arith.maximumf %31, %32 : vector<32x256xf32>
    %c1 = arith.constant 1 : index
    %c0_29 = arith.constant 0 : index
    %c0_30 = arith.constant 0 : index
    %34 = vector.load %arg4[%c1, %c0_29, %c0_30] : memref<7x32x32xf32, #tpu.memory_space<vmem>>, vector<1x32x32xf32>
    %35 = vector.shape_cast %34 : vector<1x32x32xf32> to vector<32x32xf32>
    %cst_31 = arith.constant dense<0.000000e+00> : vector<32x256xf32>
    %36 = tpu.matmul %35, %24, %cst_31 {dimension_numbers = #tpu.dot_dimension_numbers<[1], [0], [0], [1], [0, 0, 1, 1], [], []>} : vector<32x32xf32>, vector<32x256xf32>, vector<32x256xf32> -> vector<32x256xf32>
    %c1_32 = arith.constant 1 : index
    %c0_33 = arith.constant 0 : index
    %c0_34 = arith.constant 0 : index
    %37 = vector.load %arg5[%c1_32, %c0_33, %c0_34] : memref<7x32x1xf32, #tpu.memory_space<vmem>>, vector<1x32x1xf32>
    %38 = vector.shape_cast %37 : vector<1x32x1xf32> to vector<32x1xf32>
    %39 = vector.broadcast %38 : vector<32x1xf32> to vector<32x256xf32>
    %40 = arith.addf %36, %39 : vector<32x256xf32>
    %cst_35 = arith.constant 0.000000e+00 : f32
    %41 = vector.broadcast %cst_35 : f32 to vector<32x256xf32>
    %42 = arith.maximumf %40, %41 : vector<32x256xf32>
    %c1_36 = arith.constant 1 : index
    %c0_37 = arith.constant 0 : index
    %c0_38 = arith.constant 0 : index
    %43 = vector.load %arg4[%c1_36, %c0_37, %c0_38] : memref<7x32x32xf32, #tpu.memory_space<vmem>>, vector<1x32x32xf32>
    %44 = vector.shape_cast %43 : vector<1x32x32xf32> to vector<32x32xf32>
    %cst_39 = arith.constant dense<0.000000e+00> : vector<32x256xf32>
    %45 = tpu.matmul %44, %33, %cst_39 {dimension_numbers = #tpu.dot_dimension_numbers<[1], [0], [0], [1], [0, 0, 1, 1], [], []>} : vector<32x32xf32>, vector<32x256xf32>, vector<32x256xf32> -> vector<32x256xf32>
    %c1_40 = arith.constant 1 : index
    %c0_41 = arith.constant 0 : index
    %c0_42 = arith.constant 0 : index
    %46 = vector.load %arg5[%c1_40, %c0_41, %c0_42] : memref<7x32x1xf32, #tpu.memory_space<vmem>>, vector<1x32x1xf32>
    %47 = vector.shape_cast %46 : vector<1x32x1xf32> to vector<32x1xf32>
    %48 = vector.broadcast %47 : vector<32x1xf32> to vector<32x256xf32>
    %49 = arith.addf %45, %48 : vector<32x256xf32>
    %cst_43 = arith.constant 0.000000e+00 : f32
    %50 = vector.broadcast %cst_43 : f32 to vector<32x256xf32>
    %51 = arith.maximumf %49, %50 : vector<32x256xf32>
    %c2 = arith.constant 2 : index
    %c0_44 = arith.constant 0 : index
    %c0_45 = arith.constant 0 : index
    %52 = vector.load %arg4[%c2, %c0_44, %c0_45] : memref<7x32x32xf32, #tpu.memory_space<vmem>>, vector<1x32x32xf32>
    %53 = vector.shape_cast %52 : vector<1x32x32xf32> to vector<32x32xf32>
    %cst_46 = arith.constant dense<0.000000e+00> : vector<32x256xf32>
    %54 = tpu.matmul %53, %42, %cst_46 {dimension_numbers = #tpu.dot_dimension_numbers<[1], [0], [0], [1], [0, 0, 1, 1], [], []>} : vector<32x32xf32>, vector<32x256xf32>, vector<32x256xf32> -> vector<32x256xf32>
    %c2_47 = arith.constant 2 : index
    %c0_48 = arith.constant 0 : index
    %c0_49 = arith.constant 0 : index
    %55 = vector.load %arg5[%c2_47, %c0_48, %c0_49] : memref<7x32x1xf32, #tpu.memory_space<vmem>>, vector<1x32x1xf32>
    %56 = vector.shape_cast %55 : vector<1x32x1xf32> to vector<32x1xf32>
    %57 = vector.broadcast %56 : vector<32x1xf32> to vector<32x256xf32>
    %58 = arith.addf %54, %57 : vector<32x256xf32>
    %cst_50 = arith.constant 0.000000e+00 : f32
    %59 = vector.broadcast %cst_50 : f32 to vector<32x256xf32>
    %60 = arith.maximumf %58, %59 : vector<32x256xf32>
    %c2_51 = arith.constant 2 : index
    %c0_52 = arith.constant 0 : index
    %c0_53 = arith.constant 0 : index
    %61 = vector.load %arg4[%c2_51, %c0_52, %c0_53] : memref<7x32x32xf32, #tpu.memory_space<vmem>>, vector<1x32x32xf32>
    %62 = vector.shape_cast %61 : vector<1x32x32xf32> to vector<32x32xf32>
    %cst_54 = arith.constant dense<0.000000e+00> : vector<32x256xf32>
    %63 = tpu.matmul %62, %51, %cst_54 {dimension_numbers = #tpu.dot_dimension_numbers<[1], [0], [0], [1], [0, 0, 1, 1], [], []>} : vector<32x32xf32>, vector<32x256xf32>, vector<32x256xf32> -> vector<32x256xf32>
    %c2_55 = arith.constant 2 : index
    %c0_56 = arith.constant 0 : index
    %c0_57 = arith.constant 0 : index
    %64 = vector.load %arg5[%c2_55, %c0_56, %c0_57] : memref<7x32x1xf32, #tpu.memory_space<vmem>>, vector<1x32x1xf32>
    %65 = vector.shape_cast %64 : vector<1x32x1xf32> to vector<32x1xf32>
    %66 = vector.broadcast %65 : vector<32x1xf32> to vector<32x256xf32>
    %67 = arith.addf %63, %66 : vector<32x256xf32>
    %cst_58 = arith.constant 0.000000e+00 : f32
    %68 = vector.broadcast %cst_58 : f32 to vector<32x256xf32>
    %69 = arith.maximumf %67, %68 : vector<32x256xf32>
    %c3 = arith.constant 3 : index
    %c0_59 = arith.constant 0 : index
    %c0_60 = arith.constant 0 : index
    %70 = vector.load %arg4[%c3, %c0_59, %c0_60] : memref<7x32x32xf32, #tpu.memory_space<vmem>>, vector<1x32x32xf32>
    %71 = vector.shape_cast %70 : vector<1x32x32xf32> to vector<32x32xf32>
    %cst_61 = arith.constant dense<0.000000e+00> : vector<32x256xf32>
    %72 = tpu.matmul %71, %60, %cst_61 {dimension_numbers = #tpu.dot_dimension_numbers<[1], [0], [0], [1], [0, 0, 1, 1], [], []>} : vector<32x32xf32>, vector<32x256xf32>, vector<32x256xf32> -> vector<32x256xf32>
    %c3_62 = arith.constant 3 : index
    %c0_63 = arith.constant 0 : index
    %c0_64 = arith.constant 0 : index
    %73 = vector.load %arg5[%c3_62, %c0_63, %c0_64] : memref<7x32x1xf32, #tpu.memory_space<vmem>>, vector<1x32x1xf32>
    %74 = vector.shape_cast %73 : vector<1x32x1xf32> to vector<32x1xf32>
    %75 = vector.broadcast %74 : vector<32x1xf32> to vector<32x256xf32>
    %76 = arith.addf %72, %75 : vector<32x256xf32>
    %cst_65 = arith.constant 0.000000e+00 : f32
    %77 = vector.broadcast %cst_65 : f32 to vector<32x256xf32>
    %78 = arith.maximumf %76, %77 : vector<32x256xf32>
    %c3_66 = arith.constant 3 : index
    %c0_67 = arith.constant 0 : index
    %c0_68 = arith.constant 0 : index
    %79 = vector.load %arg4[%c3_66, %c0_67, %c0_68] : memref<7x32x32xf32, #tpu.memory_space<vmem>>, vector<1x32x32xf32>
    %80 = vector.shape_cast %79 : vector<1x32x32xf32> to vector<32x32xf32>
    %cst_69 = arith.constant dense<0.000000e+00> : vector<32x256xf32>
    %81 = tpu.matmul %80, %69, %cst_69 {dimension_numbers = #tpu.dot_dimension_numbers<[1], [0], [0], [1], [0, 0, 1, 1], [], []>} : vector<32x32xf32>, vector<32x256xf32>, vector<32x256xf32> -> vector<32x256xf32>
    %c3_70 = arith.constant 3 : index
    %c0_71 = arith.constant 0 : index
    %c0_72 = arith.constant 0 : index
    %82 = vector.load %arg5[%c3_70, %c0_71, %c0_72] : memref<7x32x1xf32, #tpu.memory_space<vmem>>, vector<1x32x1xf32>
    %83 = vector.shape_cast %82 : vector<1x32x1xf32> to vector<32x1xf32>
    %84 = vector.broadcast %83 : vector<32x1xf32> to vector<32x256xf32>
    %85 = arith.addf %81, %84 : vector<32x256xf32>
    %cst_73 = arith.constant 0.000000e+00 : f32
    %86 = vector.broadcast %cst_73 : f32 to vector<32x256xf32>
    %87 = arith.maximumf %85, %86 : vector<32x256xf32>
    %c4 = arith.constant 4 : index
    %c0_74 = arith.constant 0 : index
    %c0_75 = arith.constant 0 : index
    %88 = vector.load %arg4[%c4, %c0_74, %c0_75] : memref<7x32x32xf32, #tpu.memory_space<vmem>>, vector<1x32x32xf32>
    %89 = vector.shape_cast %88 : vector<1x32x32xf32> to vector<32x32xf32>
    %cst_76 = arith.constant dense<0.000000e+00> : vector<32x256xf32>
    %90 = tpu.matmul %89, %78, %cst_76 {dimension_numbers = #tpu.dot_dimension_numbers<[1], [0], [0], [1], [0, 0, 1, 1], [], []>} : vector<32x32xf32>, vector<32x256xf32>, vector<32x256xf32> -> vector<32x256xf32>
    %c4_77 = arith.constant 4 : index
    %c0_78 = arith.constant 0 : index
    %c0_79 = arith.constant 0 : index
    %91 = vector.load %arg5[%c4_77, %c0_78, %c0_79] : memref<7x32x1xf32, #tpu.memory_space<vmem>>, vector<1x32x1xf32>
    %92 = vector.shape_cast %91 : vector<1x32x1xf32> to vector<32x1xf32>
    %93 = vector.broadcast %92 : vector<32x1xf32> to vector<32x256xf32>
    %94 = arith.addf %90, %93 : vector<32x256xf32>
    %cst_80 = arith.constant 0.000000e+00 : f32
    %95 = vector.broadcast %cst_80 : f32 to vector<32x256xf32>
    %96 = arith.maximumf %94, %95 : vector<32x256xf32>
    %c4_81 = arith.constant 4 : index
    %c0_82 = arith.constant 0 : index
    %c0_83 = arith.constant 0 : index
    %97 = vector.load %arg4[%c4_81, %c0_82, %c0_83] : memref<7x32x32xf32, #tpu.memory_space<vmem>>, vector<1x32x32xf32>
    %98 = vector.shape_cast %97 : vector<1x32x32xf32> to vector<32x32xf32>
    %cst_84 = arith.constant dense<0.000000e+00> : vector<32x256xf32>
    %99 = tpu.matmul %98, %87, %cst_84 {dimension_numbers = #tpu.dot_dimension_numbers<[1], [0], [0], [1], [0, 0, 1, 1], [], []>} : vector<32x32xf32>, vector<32x256xf32>, vector<32x256xf32> -> vector<32x256xf32>
    %c4_85 = arith.constant 4 : index
    %c0_86 = arith.constant 0 : index
    %c0_87 = arith.constant 0 : index
    %100 = vector.load %arg5[%c4_85, %c0_86, %c0_87] : memref<7x32x1xf32, #tpu.memory_space<vmem>>, vector<1x32x1xf32>
    %101 = vector.shape_cast %100 : vector<1x32x1xf32> to vector<32x1xf32>
    %102 = vector.broadcast %101 : vector<32x1xf32> to vector<32x256xf32>
    %103 = arith.addf %99, %102 : vector<32x256xf32>
    %cst_88 = arith.constant 0.000000e+00 : f32
    %104 = vector.broadcast %cst_88 : f32 to vector<32x256xf32>
    %105 = arith.maximumf %103, %104 : vector<32x256xf32>
    %c5 = arith.constant 5 : index
    %c0_89 = arith.constant 0 : index
    %c0_90 = arith.constant 0 : index
    %106 = vector.load %arg4[%c5, %c0_89, %c0_90] : memref<7x32x32xf32, #tpu.memory_space<vmem>>, vector<1x32x32xf32>
    %107 = vector.shape_cast %106 : vector<1x32x32xf32> to vector<32x32xf32>
    %cst_91 = arith.constant dense<0.000000e+00> : vector<32x256xf32>
    %108 = tpu.matmul %107, %96, %cst_91 {dimension_numbers = #tpu.dot_dimension_numbers<[1], [0], [0], [1], [0, 0, 1, 1], [], []>} : vector<32x32xf32>, vector<32x256xf32>, vector<32x256xf32> -> vector<32x256xf32>
    %c5_92 = arith.constant 5 : index
    %c0_93 = arith.constant 0 : index
    %c0_94 = arith.constant 0 : index
    %109 = vector.load %arg5[%c5_92, %c0_93, %c0_94] : memref<7x32x1xf32, #tpu.memory_space<vmem>>, vector<1x32x1xf32>
    %110 = vector.shape_cast %109 : vector<1x32x1xf32> to vector<32x1xf32>
    %111 = vector.broadcast %110 : vector<32x1xf32> to vector<32x256xf32>
    %112 = arith.addf %108, %111 : vector<32x256xf32>
    %cst_95 = arith.constant 0.000000e+00 : f32
    %113 = vector.broadcast %cst_95 : f32 to vector<32x256xf32>
    %114 = arith.maximumf %112, %113 : vector<32x256xf32>
    %c5_96 = arith.constant 5 : index
    %c0_97 = arith.constant 0 : index
    %c0_98 = arith.constant 0 : index
    %115 = vector.load %arg4[%c5_96, %c0_97, %c0_98] : memref<7x32x32xf32, #tpu.memory_space<vmem>>, vector<1x32x32xf32>
    %116 = vector.shape_cast %115 : vector<1x32x32xf32> to vector<32x32xf32>
    %cst_99 = arith.constant dense<0.000000e+00> : vector<32x256xf32>
    %117 = tpu.matmul %116, %105, %cst_99 {dimension_numbers = #tpu.dot_dimension_numbers<[1], [0], [0], [1], [0, 0, 1, 1], [], []>} : vector<32x32xf32>, vector<32x256xf32>, vector<32x256xf32> -> vector<32x256xf32>
    %c5_100 = arith.constant 5 : index
    %c0_101 = arith.constant 0 : index
    %c0_102 = arith.constant 0 : index
    %118 = vector.load %arg5[%c5_100, %c0_101, %c0_102] : memref<7x32x1xf32, #tpu.memory_space<vmem>>, vector<1x32x1xf32>
    %119 = vector.shape_cast %118 : vector<1x32x1xf32> to vector<32x1xf32>
    %120 = vector.broadcast %119 : vector<32x1xf32> to vector<32x256xf32>
    %121 = arith.addf %117, %120 : vector<32x256xf32>
    %cst_103 = arith.constant 0.000000e+00 : f32
    %122 = vector.broadcast %cst_103 : f32 to vector<32x256xf32>
    %123 = arith.maximumf %121, %122 : vector<32x256xf32>
    %c6 = arith.constant 6 : index
    %c0_104 = arith.constant 0 : index
    %c0_105 = arith.constant 0 : index
    %124 = vector.load %arg4[%c6, %c0_104, %c0_105] : memref<7x32x32xf32, #tpu.memory_space<vmem>>, vector<1x32x32xf32>
    %125 = vector.shape_cast %124 : vector<1x32x32xf32> to vector<32x32xf32>
    %cst_106 = arith.constant dense<0.000000e+00> : vector<32x256xf32>
    %126 = tpu.matmul %125, %114, %cst_106 {dimension_numbers = #tpu.dot_dimension_numbers<[1], [0], [0], [1], [0, 0, 1, 1], [], []>} : vector<32x32xf32>, vector<32x256xf32>, vector<32x256xf32> -> vector<32x256xf32>
    %c6_107 = arith.constant 6 : index
    %c0_108 = arith.constant 0 : index
    %c0_109 = arith.constant 0 : index
    %127 = vector.load %arg5[%c6_107, %c0_108, %c0_109] : memref<7x32x1xf32, #tpu.memory_space<vmem>>, vector<1x32x1xf32>
    %128 = vector.shape_cast %127 : vector<1x32x1xf32> to vector<32x1xf32>
    %129 = vector.broadcast %128 : vector<32x1xf32> to vector<32x256xf32>
    %130 = arith.addf %126, %129 : vector<32x256xf32>
    %cst_110 = arith.constant 0.000000e+00 : f32
    %131 = vector.broadcast %cst_110 : f32 to vector<32x256xf32>
    %132 = arith.maximumf %130, %131 : vector<32x256xf32>
    %c6_111 = arith.constant 6 : index
    %c0_112 = arith.constant 0 : index
    %c0_113 = arith.constant 0 : index
    %133 = vector.load %arg4[%c6_111, %c0_112, %c0_113] : memref<7x32x32xf32, #tpu.memory_space<vmem>>, vector<1x32x32xf32>
    %134 = vector.shape_cast %133 : vector<1x32x32xf32> to vector<32x32xf32>
    %cst_114 = arith.constant dense<0.000000e+00> : vector<32x256xf32>
    %135 = tpu.matmul %134, %123, %cst_114 {dimension_numbers = #tpu.dot_dimension_numbers<[1], [0], [0], [1], [0, 0, 1, 1], [], []>} : vector<32x32xf32>, vector<32x256xf32>, vector<32x256xf32> -> vector<32x256xf32>
    %c6_115 = arith.constant 6 : index
    %c0_116 = arith.constant 0 : index
    %c0_117 = arith.constant 0 : index
    %136 = vector.load %arg5[%c6_115, %c0_116, %c0_117] : memref<7x32x1xf32, #tpu.memory_space<vmem>>, vector<1x32x1xf32>
    %137 = vector.shape_cast %136 : vector<1x32x1xf32> to vector<32x1xf32>
    %138 = vector.broadcast %137 : vector<32x1xf32> to vector<32x256xf32>
    %139 = arith.addf %135, %138 : vector<32x256xf32>
    %cst_118 = arith.constant 0.000000e+00 : f32
    %140 = vector.broadcast %cst_118 : f32 to vector<32x256xf32>
    %141 = arith.maximumf %139, %140 : vector<32x256xf32>
    %c0_119 = arith.constant 0 : index
    %c0_120 = arith.constant 0 : index
    %142 = vector.load %arg6[%c0_119, %c0_120] : memref<8x32xf32, #tpu.memory_space<vmem>>, vector<8x32xf32>
    %cst_121 = arith.constant dense<0.000000e+00> : vector<8x256xf32>
    %143 = tpu.matmul %142, %132, %cst_121 {dimension_numbers = #tpu.dot_dimension_numbers<[1], [0], [0], [1], [0, 0, 1, 1], [], []>} : vector<8x32xf32>, vector<32x256xf32>, vector<8x256xf32> -> vector<8x256xf32>
    %c0_122 = arith.constant 0 : index
    %c0_123 = arith.constant 0 : index
    %144 = vector.load %arg7[%c0_122, %c0_123] : memref<8x1xf32, #tpu.memory_space<vmem>>, vector<8x1xf32>
    %145 = vector.broadcast %144 : vector<8x1xf32> to vector<8x256xf32>
    %146 = arith.addf %143, %145 : vector<8x256xf32>
    %147 = tpu.iota {dimensions = array<i32: 0>} : vector<8x256xi32>
    %c3_i32 = arith.constant 3 : i32
    %148 = vector.broadcast %c3_i32 : i32 to vector<8x256xi32>
    %149 = arith.cmpi slt, %147, %148 : vector<8x256xi32>
    %150 = arith.negf %146 : vector<8x256xf32>
    %151 = math.exp %150 : vector<8x256xf32>
    %cst_124 = arith.constant 1.000000e+00 : f32
    %152 = vector.broadcast %cst_124 : f32 to vector<8x256xf32>
    %153 = arith.addf %152, %151 : vector<8x256xf32>
    %154 = arith.divf %152, %153 : vector<8x256xf32>
    %155 = arith.select %149, %154, %146 : vector<8x256xi1>, vector<8x256xf32>
    %c0_125 = arith.constant 0 : index
    %c0_126 = arith.constant 0 : index
    %156 = vector.load %arg8[%c0_125, %c0_126] : memref<8x512xf32, #tpu.memory_space<vmem>>, vector<8x256xf32>
    tpu.vector_store %arg8[%c0_125, %c0_126], %155 {strides = array<i32>} : memref<8x512xf32, #tpu.memory_space<vmem>>, vector<8x256xf32>,
    %c0_127 = arith.constant 0 : index
    %c0_128 = arith.constant 0 : index
    %157 = vector.load %arg6[%c0_127, %c0_128] : memref<8x32xf32, #tpu.memory_space<vmem>>, vector<8x32xf32>
    %cst_129 = arith.constant dense<0.000000e+00> : vector<8x256xf32>
    %158 = tpu.matmul %157, %141, %cst_129 {dimension_numbers = #tpu.dot_dimension_numbers<[1], [0], [0], [1], [0, 0, 1, 1], [], []>} : vector<8x32xf32>, vector<32x256xf32>, vector<8x256xf32> -> vector<8x256xf32>
    %c0_130 = arith.constant 0 : index
    %c0_131 = arith.constant 0 : index
    %159 = vector.load %arg7[%c0_130, %c0_131] : memref<8x1xf32, #tpu.memory_space<vmem>>, vector<8x1xf32>
    %160 = vector.broadcast %159 : vector<8x1xf32> to vector<8x256xf32>
    %161 = arith.addf %158, %160 : vector<8x256xf32>
    %162 = tpu.iota {dimensions = array<i32: 0>} : vector<8x256xi32>
    %c3_i32_132 = arith.constant 3 : i32
    %163 = vector.broadcast %c3_i32_132 : i32 to vector<8x256xi32>
    %164 = arith.cmpi slt, %162, %163 : vector<8x256xi32>
    %165 = arith.negf %161 : vector<8x256xf32>
    %166 = math.exp %165 : vector<8x256xf32>
    %cst_133 = arith.constant 1.000000e+00 : f32
    %167 = vector.broadcast %cst_133 : f32 to vector<8x256xf32>
    %168 = arith.addf %167, %166 : vector<8x256xf32>
    %169 = arith.divf %167, %168 : vector<8x256xf32>
    %170 = arith.select %164, %169, %161 : vector<8x256xi1>, vector<8x256xf32>
    %c0_134 = arith.constant 0 : index
    %c256_135 = arith.constant 256 : index
    %171 = vector.load %arg8[%c0_134, %c256_135] : memref<8x512xf32, #tpu.memory_space<vmem>>, vector<8x256xf32>
    tpu.vector_store %arg8[%c0_134, %c256_135], %170 {strides = array<i32>} : memref<8x512xf32, #tpu.memory_space<vmem>>, vector<8x256xf32>,
    return
  }
  func.func @transform_0(%arg0: i32) -> (i32, i32) {
    %c0_i32 = arith.constant 0 : i32
    %c0_i32_0 = arith.constant 0 : i32
    return %arg0, %c0_i32 : i32, i32
  }
  func.func @transform_1(%arg0: i32) -> (i32, i32) {
    %c0_i32 = arith.constant 0 : i32
    %c0_i32_0 = arith.constant 0 : i32
    %c0_i32_1 = arith.constant 0 : i32
    return %c0_i32, %c0_i32_0 : i32, i32
  }
  func.func @transform_2(%arg0: i32) -> (i32, i32) {
    %c0_i32 = arith.constant 0 : i32
    %c0_i32_0 = arith.constant 0 : i32
    %c0_i32_1 = arith.constant 0 : i32
    return %c0_i32, %c0_i32_0 : i32, i32
  }
  func.func @transform_3(%arg0: i32) -> (i32, i32, i32) {
    %c0_i32 = arith.constant 0 : i32
    %c0_i32_0 = arith.constant 0 : i32
    %c0_i32_1 = arith.constant 0 : i32
    %c0_i32_2 = arith.constant 0 : i32
    return %c0_i32, %c0_i32_0, %c0_i32_1 : i32, i32, i32
  }
  func.func @transform_4(%arg0: i32) -> (i32, i32, i32) {
    %c0_i32 = arith.constant 0 : i32
    %c0_i32_0 = arith.constant 0 : i32
    %c0_i32_1 = arith.constant 0 : i32
    %c0_i32_2 = arith.constant 0 : i32
    return %c0_i32, %c0_i32_0, %c0_i32_1 : i32, i32, i32
  }
  func.func @transform_5(%arg0: i32) -> (i32, i32) {
    %c0_i32 = arith.constant 0 : i32
    %c0_i32_0 = arith.constant 0 : i32
    %c0_i32_1 = arith.constant 0 : i32
    return %c0_i32, %c0_i32_0 : i32, i32
  }
  func.func @transform_6(%arg0: i32) -> (i32, i32) {
    %c0_i32 = arith.constant 0 : i32
    %c0_i32_0 = arith.constant 0 : i32
    %c0_i32_1 = arith.constant 0 : i32
    return %c0_i32, %c0_i32_0 : i32, i32
  }
  func.func @transform_7(%arg0: i32) -> (i32, i32) {
    %c0_i32 = arith.constant 0 : i32
    %c0_i32_0 = arith.constant 0 : i32
    return %c0_i32, %arg0 : i32, i32
  }
}

</mosaic_0001>

<bundles_post_ra>
// kernel: tpu_custom_call.1
= control target key start
LH: loop header
LB: loop body
LE: loop exit
PB: predicated region body
PF: predicated region fallthrough
CT: control target
= control target key end

     0   :  { %12 = vsyncpa [#allocation3], 0  ;;  %s3933_s0 = inlined_call_operand.vmem [shape: f32[4096,63], index: 0, kind: input, shape index: {}]   ;;  %s3934_s1 = inlined_call_operand.vmem [shape: f32[32,63], index: 1, kind: input, shape index: {}]   ;;  %s3935_s2 = inlined_call_operand.vmem [shape: f32[32,1], index: 2, kind: input, shape index: {}]   ;;  %s3936_s3 = inlined_call_operand.vmem [shape: f32[7,32,32], index: 3, kind: input, shape index: {}]   ;;  %s3937_s4 = inlined_call_operand.vmem [shape: f32[7,32,1], index: 4, kind: input, shape index: {}]   ;;  %s3938_s5 = inlined_call_operand.vmem [shape: f32[8,32], index: 5, kind: input, shape index: {}]   ;;  %s3939_s6 = inlined_call_operand.vmem [shape: f32[8,1], index: 6, kind: input, shape index: {}]   ;;  %s3940_s7 = inlined_call_operand.hbm [shape: f32[8,4096], index: 7, kind: output, shape index: {}]  }
   0x1   :  { %14 = vsyncpa [#allocation3 + $0x1], 0  ;;  %s3358_s24 = smov 0   ;;  %s3360_s25 = smov 0  }
   0x2   :  { %s3362_s26 = smov 0   ;;  %s3364_s27 = smov 0  }
   0x3 LB: > { %s3379_s28 = sadd.s32 4294967295, %s3313_s27   ;;  %s2693_s29 = sadd.s32 4294967294, %s3313_s27   ;;  %s3313_s27 = sphi %s3364_s27, %s3948_s27   ;;  %s3309_s26 = sphi %s3362_s26, %s3947_s26   ;;  %s3305_s25 = sphi %s3360_s25, %s3946_s25   ;;  %s3301_s24 = sphi %s3358_s24, %s3945_s24  }
   0x4   : > { %s3383_s30 = sadd.s32 1, %s3313_s27   ;;  %s179_s8 = sadd.s32 1, %s3309_s26 }
   0x5   : > { %s176_s9 = ssub.s32 %s3313_s27, %s3383_s30  ;;  %p189_p0 = scmp.ne.s32.totalorder %s3309_s26, %s3305_s25 }
   0x6   : > { %p177_p1 = scmp.eq.s32.totalorder %s176_s9, 0  ;;  %p190_p2 = scmp.eq.s32.totalorder %s3379_s28, 7 }
   0x7   : > { %p195_p3 = scmp.ne.s32.totalorder %s3305_s25, %s3301_s24  ;;  %p196_p4 = scmp.eq.s32.totalorder %s2693_s29, 7 }
   0x8   : > { %s3394_s10 = scalar_select %p177_p1, %s3309_s26, %s179_s8  }
   0x9   : > { %p3396_p5 = por %p190_p2, %p189_p0  ;;  %p3400_p6 = por %p196_p4, %p195_p3 }
   0xa   : > { %p2696_p7 = scmp.ge.s32.totalorder %s3313_s27, 1  ;;  %p241_p8 = scmp.lt.s32.totalorder %s3313_s27, 9 }
   0xc   : > { %p242_p9 = pnand %p2696_p7, %p241_p8 }
   0xd   : > { %s2698_s13 = sshll.u32 (!%p242_p9), %s3379_s28, 6  ;;  %vm372_vm0 = vcmask (!%p242_p9), 515072   ;;  %v3410_v0 = vld [vmem:[%s3934_s1] sm:$0xff] (!%p242_p9)  ;;  %v3315_v2 = vmov (!%p242_p9), 0   ;;  %v350_v3 = vld [vmem:[%s3935_s2 + $0x10] sm:$0xff] (!%p242_p9)  ;;  %v349_v4 = vld [vmem:[%s3935_s2 + $0x8] sm:$0xff] (!%p242_p9) }
   0xe   : > { %245 = sbr.rel (%p242_p9) target bundleno = 2230 (0x8b6), region = 48  ;;  %p274_p10 = scmp.lt.s32.totalorder (!%p242_p9), %s2698_s13, 511  ;;  %2920 = vmatprep.mubr.msk.f32.mxu0 (!%p242_p9), %vm372_vm0, %v3410_v0  ;;  %2960 = vmatprep.mubr.msk.f32.mxu1 (!%p242_p9), %vm372_vm0, %v3410_v0  ;;  %v348_v1 = vld [vmem:[%s3935_s2] sm:$0xff] (!%p242_p9)  ;;  %v351_v5 = vld [vmem:[%s3935_s2 + $0x18] sm:$0xff] (!%p242_p9)  ;;  %vm3435_vm1 = vmpackc.low (!%p242_p9), %vm372_vm0, %vm372_vm0  ;;  %vm799_vm2 = vcmask (!%p242_p9), 261120  }
   0xf   : > { %3233 = vset.pattern.permute.xlu0 (!%p242_p9), %v3315_v2  ;;  %3234 = vset.pattern.permute.xlu1 (!%p242_p9), %v3315_v2  ;;  %v775_v10 = vld [vmem:[%s3937_s4] sm:$0xff] (!%p242_p9)  ;;  %v777_v26 = vld [vmem:[%s3937_s4 + $0x10] sm:$0xff] (!%p242_p9)  ;;  %v776_v27 = vld [vmem:[%s3937_s4 + $0x8] sm:$0xff] (!%p242_p9)  ;;  %s2887_s16 = sshll.u32 (!%p242_p9), %s3379_s28, 9  ;;  %s3317_s22 = smov (!%p242_p9), [#allocation2]  }
  0x10   : > { %354 = vperm.xlu0 (!%p242_p9), %3233, %v348_v1   ;;  %364 = vperm.xlu1 (!%p242_p9), %3234, %v350_v3   ;;  %v778_v37 = vld [vmem:[%s3937_s4 + $0x18] sm:$0xff] (!%p242_p9)  ;;  %v2784_v41 = vld [vmem:[%s3937_s4 + $0x20] sm:$0xff] (!%p242_p9)  ;;  %v2785_v42 = vld [vmem:[%s3937_s4 + $0x28] sm:$0xff] (!%p242_p9)  ;;  %s3890_s20 = scalar_lea.hbm (!%p242_p9), %s3940_s7, %s2887_s16  ;;  %s3255_s23 = sshll.u32 (!%p242_p9), %s3317_s22, 4  ;;  %s3256_s23 = int_to_ptr.vmem [resolvable:$false] %s3255_s23 }
  0x11   : > { %v2786_v51 = vld [vmem:[%s3937_s4 + $0x30] sm:$0xff] (!%p242_p9)  ;;  %v2787_v53 = vld [vmem:[%s3937_s4 + $0x38] sm:$0xff] (!%p242_p9)  ;;  %v2800_v57 = vld [vmem:[%s3937_s4 + $0x40] sm:$0xff] (!%p242_p9) }
  0x12   : > { %v2801_v58 = vld [vmem:[%s3937_s4 + $0x48] sm:$0xff] (!%p242_p9)  ;;  %v346_v6 = vld [vmem:[%s3934_s1 + $0x10] sm:$0xff] (!%p242_p9) }
  0x14   : > { %359 = vperm.xlu0 (!%p242_p9), %3233, %v349_v4   ;;  %369 = vperm.xlu1 (!%p242_p9), %3234, %v351_v5   ;;  %v2802_v4 = vld [vmem:[%s3937_s4 + $0x50] sm:$0xff] (!%p242_p9) }
  0x15   : > { %s3950_s13 = smov (!%p274_p10, %s2698_s13), 511 }
  0x16   : > { %s2699_s29 = sshll.u32 %s3950_s13, 3  ;;  %s270_s13 = sand.u32 1, %s3305_s25  }
  0x17   : > { %s3431_s14 = scalar_lea.vmem %s3933_s0, %s2699_s29  ;;  %s2697_s15 = sshll.u32 %s270_s13, 5 }
  0x18   : > { %v296_v7 = vld [vmem:[%s3431_s14 + $0x80] sm:$0xff]  ;;  %v297_v8 = vld [vmem:[%s3431_s14 + $0x88] sm:$0xff]  ;;  %v298_v19 = vld [vmem:[%s3431_s14 + $0x90] sm:$0xff]  ;;  %781 = vperm.xlu0 %3233, %v775_v10   ;;  %786 = vperm.xlu1 %3234, %v776_v27   ;;  %s272_s17 = scalar_lea.vmem [#allocation2], %s2697_s15  ;;  %s2620_s28 = scalar_lea.sflag [#allocation3], %s270_s13 }
  0x19   : > { %v328_v9 = vld [vmem:[%s3431_s14 + $0x180] sm:$0xff]  ;;  %v2968_v11 = vpack.c.bf16 %v297_v8, %v296_v7  ;;  %v329_v12 = vld [vmem:[%s3431_s14 + $0x188] sm:$0xff]  ;;  %v299_v21 = vld [vmem:[%s3431_s14 + $0x98] sm:$0xff]  ;;  %s2634_s18 = sshll.u32 %s272_s17, 4  ;;  %s3257_s29 = scalar_lea.vmem %s3256_s23, 1024  ;;  %s3892_s18 = int_to_ptr.vmem [resolvable:$true] %s2634_s18 }
  0x1a   : > { %v280_v13 = vld [vmem:[%s3431_s14] sm:$0xff]  ;;  %v281_v14 = vld [vmem:[%s3431_s14 + $0x8] sm:$0xff]  ;;  %v3016_v15 = vpack.c.bf16 %v329_v12, %v328_v9  ;;  %v330_v22 = vld [vmem:[%s3431_s14 + $0x190] sm:$0xff]  ;;  %v2974_v24 = vpack.c.bf16 %v299_v21, %v298_v19  ;;  %s3251_s21 = scalar_lea.vmem %s3892_s18, 512  ;;  %p3258_p0 = scmp.lt.s32.totalorder %s3892_s18, %s3256_s23 }
  0x1b   : > { %v2971_v16 = vpack.c.bf16 %v281_v14, %v280_v13  ;;  %v312_v17 = vld [vmem:[%s3431_s14 + $0x100] sm:$0xff]  ;;  %v313_v18 = vld [vmem:[%s3431_s14 + $0x108] sm:$0xff]  ;;  %2970 = vmatprep.subr.msk.bf16.mxu0 %vm3435_vm1, %v2968_v11  ;;  %v331_v23 = vld [vmem:[%s3431_s14 + $0x198] sm:$0xff]  ;;  %p3252_p11 = scmp.ne.s32.totalorder %s3892_s18, %s3251_s21  ;;  %p3259_p1 = scmp.lt.s32.totalorder %s3257_s29, %s3251_s21 }
  0x1c   : > { %v3019_v20 = vpack.c.bf16 %v313_v18, %v312_v17  ;;  %3018 = vmatprep.subr.msk.bf16.mxu1 %vm3435_vm1, %v3016_v15  ;;  %v3022_v25 = vpack.c.bf16 %v331_v23, %v330_v22  ;;  %v282_v28 = vld [vmem:[%s3431_s14 + $0x10] sm:$0xff]  ;;  %v283_v29 = vld [vmem:[%s3431_s14 + $0x18] sm:$0xff]  ;;  %v300_v32 = vld [vmem:[%s3431_s14 + $0xa0] sm:$0xff]  ;;  %791 = vperm.xlu0 %3233, %v777_v26  }
  0x1d   : > { %2973 = vmatpush3.bf16.xpose.msk.msra.mxu0 %vm3435_vm1, %v2971_v16  ;;  %v314_v30 = vld [vmem:[%s3431_s14 + $0x110] sm:$0xff]  ;;  %v315_v31 = vld [vmem:[%s3431_s14 + $0x118] sm:$0xff]  ;;  %v301_v33 = vld [vmem:[%s3431_s14 + $0xa8] sm:$0xff]  ;;  %v2977_v36 = vpack.c.bf16 %v283_v29, %v282_v28  ;;  %796 = vperm.xlu1 %3234, %v778_v37   ;;  %p3253_p12 = pnand %p3252_p11, %p3396_p5  ;;  %p3260_p2 = por %p3259_p1, %p3258_p0 }
  0x1e   : > { %3021 = vmatpush3.bf16.xpose.msk.msra.mxu1 %vm3435_vm1, %v3019_v20  ;;  %2976 = vmatprep.subr.msk.bf16.mxu0 %vm3435_vm1, %v2974_v24  ;;  %v332_v34 = vld [vmem:[%s3431_s14 + $0x1a0] sm:$0xff]  ;;  %v333_v35 = vld [vmem:[%s3431_s14 + $0x1a8] sm:$0xff]  ;;  %v3025_v38 = vpack.c.bf16 %v315_v31, %v314_v30  ;;  %v2980_v39 = vpack.c.bf16 %v301_v33, %v300_v32  ;;  %v302_v47 = vld [vmem:[%s3431_s14 + $0xb0] sm:$0xff] }
  0x1f   : > { %3024 = vmatprep.subr.msk.bf16.mxu1 %vm3435_vm1, %v3022_v25  ;;  %v3028_v40 = vpack.c.bf16 %v333_v35, %v332_v34  ;;  %v284_v43 = vld [vmem:[%s3431_s14 + $0x20] sm:$0xff]  ;;  %v285_v44 = vld [vmem:[%s3431_s14 + $0x28] sm:$0xff]  ;;  %v303_v48 = vld [vmem:[%s3431_s14 + $0xb8] sm:$0xff]  ;;  %p3254_p13 = pneg %p3253_p12 }
  0x20   : > { %v316_v45 = vld [vmem:[%s3431_s14 + $0x120] sm:$0xff]  ;;  %v317_v46 = vld [vmem:[%s3431_s14 + $0x128] sm:$0xff]  ;;  %1018 = vperm.xlu0 %3233, %v2784_v41   ;;  %v334_v49 = vld [vmem:[%s3431_s14 + $0x1b0] sm:$0xff]  ;;  %v2983_v52 = vpack.c.bf16 %v285_v44, %v284_v43  ;;  %v2986_v55 = vpack.c.bf16 %v303_v48, %v302_v47 }
  0x21   : > { %v335_v50 = vld [vmem:[%s3431_s14 + $0x1b8] sm:$0xff]  ;;  %1023 = vperm.xlu1 %3234, %v2785_v42   ;;  %v3031_v54 = vpack.c.bf16 %v317_v46, %v316_v45  ;;  %v286_v59 = vld [vmem:[%s3431_s14 + $0x30] sm:$0xff]  ;;  %v304_v63 = vld [vmem:[%s3431_s14 + $0xc0] sm:$0xff]  ;;  %p3261_p3 = pnand %p3260_p2, %p3254_p13 }
  0x22   : > { %v3034_v56 = vpack.c.bf16 %v335_v50, %v334_v49  ;;  %v287_v60 = vld [vmem:[%s3431_s14 + $0x38] sm:$0xff]  ;;  %v318_v61 = vld [vmem:[%s3431_s14 + $0x130] sm:$0xff]  ;;  %v305_v1 = vld [vmem:[%s3431_s14 + $0xc8] sm:$0xff] }
  0x23   : > { %v319_v62 = vld [vmem:[%s3431_s14 + $0x138] sm:$0xff]  ;;  %v336_v2 = vld [vmem:[%s3431_s14 + $0x1c0] sm:$0xff]  ;;  %v337_v3 = vld [vmem:[%s3431_s14 + $0x1c8] sm:$0xff]  ;;  %v2989_v5 = vpack.c.bf16 %v287_v60, %v286_v59  ;;  %v2992_v9 = vpack.c.bf16 %v305_v1, %v304_v63 }
  0x24   : > { %1028 = vperm.xlu0 %3233, %v2786_v51   ;;  %v2803_v7 = vld [vmem:[%s3937_s4 + $0x58] sm:$0xff]  ;;  %v3037_v8 = vpack.c.bf16 %v319_v62, %v318_v61  ;;  %v3040_v10 = vpack.c.bf16 %v337_v3, %v336_v2  ;;  %v2816_v11 = vld [vmem:[%s3937_s4 + $0x60] sm:$0xff]  ;;  %v2817_v12 = vld [vmem:[%s3937_s4 + $0x68] sm:$0xff] }
  0x25   : > { %2979 = vmatpush3.bf16.xpose.msk.msra.mxu0 %vm3435_vm1, %v2977_v36  ;;  %1033 = vperm.xlu1 %3234, %v2787_v53   ;;  %v288_v13 = vld [vmem:[%s3431_s14 + $0x40] sm:$0xff]  ;;  %v289_v14 = vld [vmem:[%s3431_s14 + $0x48] sm:$0xff]  ;;  %v306_v17 = vld [vmem:[%s3431_s14 + $0xd0] sm:$0xff] }
  0x26   : > { %3027 = vmatpush3.bf16.xpose.msk.msra.mxu1 %vm3435_vm1, %v3025_v38  ;;  %2982 = vmatprep.subr.msk.bf16.mxu0 %vm3435_vm1, %v2980_v39  ;;  %v320_v15 = vld [vmem:[%s3431_s14 + $0x140] sm:$0xff]  ;;  %v321_v16 = vld [vmem:[%s3431_s14 + $0x148] sm:$0xff]  ;;  %v307_v18 = vld [vmem:[%s3431_s14 + $0xd8] sm:$0xff]  ;;  %v2995_v22 = vpack.c.bf16 %v289_v14, %v288_v13 }
  0x27   : > { %3030 = vmatprep.subr.msk.bf16.mxu1 %vm3435_vm1, %v3028_v40  ;;  %v338_v19 = vld [vmem:[%s3431_s14 + $0x1d0] sm:$0xff]  ;;  %v339_v20 = vld [vmem:[%s3431_s14 + $0x1d8] sm:$0xff]  ;;  %v3043_v24 = vpack.c.bf16 %v321_v16, %v320_v15  ;;  %v2998_v25 = vpack.c.bf16 %v307_v18, %v306_v17  ;;  %v2832_v27 = vld [vmem:[%s3937_s4 + $0x80] sm:$0xff] }
  0x28   : > { %1254 = vperm.xlu0 %3233, %v2800_v57   ;;  %v2818_v21 = vld [vmem:[%s3937_s4 + $0x70] sm:$0xff]  ;;  %v2819_v23 = vld [vmem:[%s3937_s4 + $0x78] sm:$0xff]  ;;  %v3046_v26 = vpack.c.bf16 %v339_v20, %v338_v19  ;;  %v2833_v28 = vld [vmem:[%s3937_s4 + $0x88] sm:$0xff] }
  0x29   : > { %1259 = vperm.xlu1 %3234, %v2801_v58   ;;  %v290_v29 = vld [vmem:[%s3431_s14 + $0x50] sm:$0xff]  ;;  %v291_v30 = vld [vmem:[%s3431_s14 + $0x58] sm:$0xff]  ;;  %v308_v33 = vld [vmem:[%s3431_s14 + $0xe0] sm:$0xff] }
  0x2a   : > { %v322_v31 = vld [vmem:[%s3431_s14 + $0x150] sm:$0xff]  ;;  %v323_v32 = vld [vmem:[%s3431_s14 + $0x158] sm:$0xff]  ;;  %v309_v34 = vld [vmem:[%s3431_s14 + $0xe8] sm:$0xff]  ;;  %v3001_v38 = vpack.c.bf16 %v291_v30, %v290_v29 }
  0x2b   : > { %v340_v35 = vld [vmem:[%s3431_s14 + $0x1e0] sm:$0xff]  ;;  %v341_v36 = vld [vmem:[%s3431_s14 + $0x1e8] sm:$0xff]  ;;  %v2834_v37 = vld [vmem:[%s3937_s4 + $0x90] sm:$0xff]  ;;  %v3049_v40 = vpack.c.bf16 %v323_v32, %v322_v31  ;;  %v3004_v41 = vpack.c.bf16 %v309_v34, %v308_v33 }
  0x2c   : > { %1264 = vperm.xlu0 %3233, %v2802_v4   ;;  %v2835_v39 = vld [vmem:[%s3937_s4 + $0x98] sm:$0xff]  ;;  %v3052_v42 = vpack.c.bf16 %v341_v36, %v340_v35  ;;  %v2848_v43 = vld [vmem:[%s3937_s4 + $0xa0] sm:$0xff]  ;;  %v2849_v44 = vld [vmem:[%s3937_s4 + $0xa8] sm:$0xff] }
  0x2d   : > { %2985 = vmatpush3.bf16.xpose.msk.msra.mxu0 %vm3435_vm1, %v2983_v52  ;;  %1269 = vperm.xlu1 %3234, %v2803_v7   ;;  %v292_v45 = vld [vmem:[%s3431_s14 + $0x60] sm:$0xff]  ;;  %v293_v46 = vld [vmem:[%s3431_s14 + $0x68] sm:$0xff]  ;;  %v310_v49 = vld [vmem:[%s3431_s14 + $0xf0] sm:$0xff] }
  0x2e   : > { %3033 = vmatpush3.bf16.xpose.msk.msra.mxu1 %vm3435_vm1, %v3031_v54  ;;  %2988 = vmatprep.subr.msk.bf16.mxu0 %vm3435_vm1, %v2986_v55  ;;  %v324_v47 = vld [vmem:[%s3431_s14 + $0x160] sm:$0xff]  ;;  %v325_v48 = vld [vmem:[%s3431_s14 + $0x168] sm:$0xff]  ;;  %v311_v50 = vld [vmem:[%s3431_s14 + $0xf8] sm:$0xff]  ;;  %v3007_v54 = vpack.c.bf16 %v293_v46, %v292_v45 }
  0x2f   : > { %3036 = vmatprep.subr.msk.bf16.mxu1 %vm3435_vm1, %v3034_v56  ;;  %v342_v51 = vld [vmem:[%s3431_s14 + $0x1f0] sm:$0xff]  ;;  %v343_v52 = vld [vmem:[%s3431_s14 + $0x1f8] sm:$0xff]  ;;  %v3055_v56 = vpack.c.bf16 %v325_v48, %v324_v47  ;;  %v3010_v57 = vpack.c.bf16 %v311_v50, %v310_v49  ;;  %v2864_v59 = vld [vmem:[%s3937_s4 + $0xc0] sm:$0xff] }
  0x30   : > { %1490 = vperm.xlu0 %3233, %v2816_v11   ;;  %v2850_v53 = vld [vmem:[%s3937_s4 + $0xb0] sm:$0xff]  ;;  %v2851_v55 = vld [vmem:[%s3937_s4 + $0xb8] sm:$0xff]  ;;  %v3058_v58 = vpack.c.bf16 %v343_v52, %v342_v51  ;;  %v2865_v60 = vld [vmem:[%s3937_s4 + $0xc8] sm:$0xff] }
  0x31   : > { %1495 = vperm.xlu1 %3234, %v2817_v12   ;;  %v294_v61 = vld [vmem:[%s3431_s14 + $0x70] sm:$0xff]  ;;  %v295_v62 = vld [vmem:[%s3431_s14 + $0x78] sm:$0xff]  ;;  %v2423_v7 = vld [vmem:[%s3939_s6] sm:$0xff] }
  0x32   : > { %v326_v63 = vld [vmem:[%s3431_s14 + $0x170] sm:$0xff]  ;;  %v327_v1 = vld [vmem:[%s3431_s14 + $0x178] sm:$0xff]  ;;  %v3013_v3 = vpack.c.bf16 %v295_v62, %v294_v61 }
  0x33   : > { %v2866_v2 = vld [vmem:[%s3937_s4 + $0xd0] sm:$0xff]  ;;  %v2867_v4 = vld [vmem:[%s3937_s4 + $0xd8] sm:$0xff] }
  0x34   : > { %1500 = vperm.xlu0 %3233, %v2818_v21  }
  0x35   : > { %2991 = vmatpush3.bf16.xpose.msk.msra.mxu0 %vm3435_vm1, %v2989_v5  ;;  %1505 = vperm.xlu1 %3234, %v2819_v23   ;;  %v3061_v5 = vpack.c.bf16 %v327_v1, %v326_v63 }
  0x36   : > { %3039 = vmatpush3.bf16.xpose.msk.msra.mxu1 %vm3435_vm1, %v3037_v8  ;;  %2994 = vmatprep.subr.msk.bf16.mxu0 %vm3435_vm1, %v2992_v9  ;;  %v345_v8 = vld [vmem:[%s3934_s1 + $0x8] sm:$0xff]  ;;  %v3316_v9 = vmov 0.0  }
  0x37   : > { %3042 = vmatprep.subr.msk.bf16.mxu1 %vm3435_vm1, %v3040_v10 }
  0x38   : > { %1726 = vperm.xlu0 %3233, %v2832_v27  }
  0x39   : > { %1731 = vperm.xlu1 %3234, %v2833_v28  }
  0x3c   : > { %1736 = vperm.xlu0 %3233, %v2834_v37  }
  0x3d   : > { %2997 = vmatpush3.bf16.xpose.msk.msra.mxu0 %vm3435_vm1, %v2995_v22  ;;  %1741 = vperm.xlu1 %3234, %v2835_v39  }
  0x3e   : > { %3045 = vmatpush3.bf16.xpose.msk.msra.mxu1 %vm3435_vm1, %v3043_v24  ;;  %3000 = vmatprep.subr.msk.bf16.mxu0 %vm3435_vm1, %v2998_v25 }
  0x3f   : > { %3048 = vmatprep.subr.msk.bf16.mxu1 %vm3435_vm1, %v3046_v26 }
  0x40   : > { %1962 = vperm.xlu0 %3233, %v2848_v43  }
  0x41   : > { %1967 = vperm.xlu1 %3234, %v2849_v44  }
  0x44   : > { %1972 = vperm.xlu0 %3233, %v2850_v53  }
  0x45   : > { %3003 = vmatpush3.bf16.xpose.msk.msra.mxu0 %vm3435_vm1, %v3001_v38  ;;  %1977 = vperm.xlu1 %3234, %v2851_v55  }
  0x46   : > { %3051 = vmatpush3.bf16.xpose.msk.msra.mxu1 %vm3435_vm1, %v3049_v40  ;;  %3006 = vmatprep.subr.msk.bf16.mxu0 %vm3435_vm1, %v3004_v41 }
  0x47   : > { %3054 = vmatprep.subr.msk.bf16.mxu1 %vm3435_vm1, %v3052_v42 }
  0x48   : > { %2198 = vperm.xlu0 %3233, %v2864_v59  }
  0x49   : > { %2203 = vperm.xlu1 %3234, %v2865_v60  }
  0x4c   : > { %2208 = vperm.xlu0 %3233, %v2866_v2  }
  0x4d   : > { %3009 = vmatpush3.bf16.xpose.msk.msra.mxu0 %vm3435_vm1, %v3007_v54  ;;  %2213 = vperm.xlu1 %3234, %v2867_v4  }
  0x4e   : > { %3057 = vmatpush3.bf16.xpose.msk.msra.mxu1 %vm3435_vm1, %v3055_v56  ;;  %3012 = vmatprep.subr.msk.bf16.mxu0 %vm3435_vm1, %v3010_v57 }
  0x4f   : > { %3060 = vmatprep.subr.msk.bf16.mxu1 %vm3435_vm1, %v3058_v58 }
  0x50   : > { %2426 = vperm.xlu0 %3233, %v2423_v7  }
  0x51   : > { %2526 = vperm.xlu1 %3234, %v2423_v7  }
  0x55   : > { %3015 = vmatpush3.bf16.xpose.msk.msra.mxu0 %vm3435_vm1, %v3013_v3 }
  0x56   : > { %3063 = vmatpush3.bf16.xpose.msk.msra.mxu1 %vm3435_vm1, %v3061_v5 }
  0x5c   : > { %2921 = vmatmul.mubr.msk.f32.vlgmr.msra.gmra.mrb[0].mxu0 %vm372_vm0, %v3410_v0 }
  0x5d   : > { %2961 = vmatmul.mubr.msk.f32.vlgmr.msra.gmra.mrb[0].mxu1 %vm372_vm0, %v3410_v0  ;;  %2922 = vmatprep.mubr.msk.f32.mxu0 %vm372_vm0, %v345_v8  ;;  %v347_v0 = vld [vmem:[%s3934_s1 + $0x18] sm:$0xff] }
  0x5e   : > { %2962 = vmatprep.mubr.msk.f32.mxu1 %vm372_vm0, %v345_v8 }
  0x60   : > { %2923 = vmatmul.mubr.msk.f32.gmra.mrb[2].mxu0 %vm372_vm0, %v345_v8 }
  0x61   : > { %2963 = vmatmul.mubr.msk.f32.gmra.mrb[2].mxu1 %vm372_vm0, %v345_v8  ;;  %2924 = vmatprep.mubr.msk.f32.mxu0 %vm372_vm0, %v346_v6  ;;  %v771_v8 = vld [vmem:[%s3936_s3] sm:$0xff] }
  0x62   : > { %2964 = vmatprep.mubr.msk.f32.mxu1 %vm372_vm0, %v346_v6 }
  0x64   : > { %2925 = vmatmul.mubr.msk.f32.gmra.mrb[4].mxu0 %vm372_vm0, %v346_v6 }
  0x65   : > { %2965 = vmatmul.mubr.msk.f32.gmra.mrb[4].mxu1 %vm372_vm0, %v346_v6  ;;  %2926 = vmatprep.mubr.msk.f32.mxu0 %vm372_vm0, %v347_v0  ;;  %v772_v6 = vld [vmem:[%s3936_s3 + $0x8] sm:$0xff] }
  0x66   : > { %2966 = vmatprep.mubr.msk.f32.mxu1 %vm372_vm0, %v347_v0 }
  0x68   : > { %2927 = vmatmul.mubr.msk.f32.gmra.mrb[6].mxu0 %vm372_vm0, %v347_v0 }
  0x69   : > { %2967 = vmatmul.mubr.msk.f32.gmra.mrb[6].mxu1 %vm372_vm0, %v347_v0  ;;  %876 = vmatprep.mubr.f32.mxu0 %v3316_v9  ;;  %v773_v0 = vld [vmem:[%s3936_s3 + $0x10] sm:$0xff] }
  0x6a   : > { %973 = vmatprep.mubr.f32.mxu1 %v3316_v9 }
  0x8f   : > { %v355_v10 = vpop.permute.xlu0 %354  ;;  %v365_v24 = vpop.permute.xlu1 %364 }
  0x93   : > { %v360_v16 = vpop.permute.xlu0 %359  ;;  %v370_v46 = vpop.permute.xlu1 %369 }
 0x12f   : > { %v547_v11 = vpop.f32.mrb[0].mxu0 }
 0x130   : > { %v740_v12 = vpop.f32.mrb[0].mxu1  ;;  %v549_v13 = vpop.f32.mrb[1].mxu0  ;;  %v548_v15 = vadd.f32 %v547_v11, %v355_v10 }
 0x131   : > { %v742_v14 = vpop.f32.mrb[1].mxu1  ;;  %v741_v17 = vadd.f32 %v740_v12, %v355_v10  ;;  %v550_v18 = vadd.f32 %v549_v13, %v355_v10 }
 0x132   : > { %v743_v20 = vadd.f32 %v742_v14, %v355_v10  ;;  %v570_v28 = vmax.f32 %v548_v15, 0.0  ;;  %v774_v10 = vld [vmem:[%s3936_s3 + $0x18] sm:$0xff]  ;;  %v782_v14 = vpop.permute.xlu0 %781 }
 0x133   : > { %v553_v19 = vpop.f32.mrb[2].mxu0  ;;  %v763_v31 = vmax.f32 %v741_v17, 0.0  ;;  %v571_v32 = vmax.f32 %v550_v18, 0.0  ;;  %v787_v17 = vpop.permute.xlu1 %786 }
 0x134   : > { %v554_v21 = vadd.f32 %v553_v19, %v360_v16  ;;  %v746_v22 = vpop.f32.mrb[2].mxu1  ;;  %v555_v23 = vpop.f32.mrb[3].mxu0  ;;  %v764_v36 = vmax.f32 %v743_v20, 0.0 }
 0x135   : > { %v747_v25 = vadd.f32 %v746_v22, %v360_v16  ;;  %v556_v26 = vadd.f32 %v555_v23, %v360_v16  ;;  %v748_v27 = vpop.f32.mrb[3].mxu1 }
 0x136   : > { %v572_v29 = vmax.f32 %v554_v21, 0.0  ;;  %v749_v30 = vadd.f32 %v748_v27, %v360_v16 }
 0x137   : > { %v765_v33 = vmax.f32 %v747_v25, 0.0  ;;  %v573_v34 = vmax.f32 %v556_v26, 0.0  ;;  %v559_v35 = vpop.f32.mrb[4].mxu0 }
 0x138   : > { %v3066_v37 = vpack.c.bf16 %v572_v29, %v570_v28  ;;  %v766_v38 = vmax.f32 %v749_v30, 0.0  ;;  %v752_v39 = vpop.f32.mrb[4].mxu1  ;;  %v561_v40 = vpop.f32.mrb[5].mxu0  ;;  %v560_v45 = vadd.f32 %v559_v35, %v365_v24 }
 0x139   : > { %v3074_v41 = vpack.c.bf16 %v765_v33, %v763_v31  ;;  %v3064_v42 = vpack.c.bf16 %v573_v34, %v571_v32  ;;  %v754_v43 = vpop.f32.mrb[5].mxu1  ;;  %v753_v47 = vadd.f32 %v752_v39, %v365_v24  ;;  %v562_v48 = vadd.f32 %v561_v40, %v365_v24 }
 0x13a   : > { %v3072_v44 = vpack.c.bf16 %v766_v38, %v764_v36  ;;  %v755_v50 = vadd.f32 %v754_v43, %v365_v24  ;;  %v574_v57 = vmax.f32 %v560_v45, 0.0 }
 0x13b   : > { %v565_v49 = vpop.f32.mrb[6].mxu0  ;;  %3065 = vmatprep.subr.bf16.mxu0 %v3064_v42  ;;  %v767_v60 = vmax.f32 %v753_v47, 0.0  ;;  %v575_v61 = vmax.f32 %v562_v48, 0.0  ;;  %v797_v47 = vpop.permute.xlu1 %796 }
 0x13c   : > { %v566_v51 = vadd.f32 %v565_v49, %v370_v46  ;;  %v758_v52 = vpop.f32.mrb[6].mxu1  ;;  %3073 = vmatprep.subr.bf16.mxu1 %v3072_v44  ;;  %v567_v53 = vpop.f32.mrb[7].mxu0  ;;  %3067 = vmatpush1.bf16.msra.mxu0 %v3066_v37  ;;  %v768_v1 = vmax.f32 %v755_v50, 0.0 }
 0x13d   : > { %v759_v54 = vadd.f32 %v758_v52, %v370_v46  ;;  %v568_v55 = vadd.f32 %v567_v53, %v370_v46  ;;  %v760_v56 = vpop.f32.mrb[7].mxu1  ;;  %3075 = vmatpush1.bf16.msra.mxu1 %v3074_v41  ;;  %v792_v41 = vpop.permute.xlu0 %791 }
 0x13e   : > { %v576_v58 = vmax.f32 %v566_v51, 0.0  ;;  %v761_v59 = vadd.f32 %v760_v56, %v370_v46 }
 0x13f   : > { %v769_v62 = vmax.f32 %v759_v54, 0.0  ;;  %v577_v63 = vmax.f32 %v568_v55, 0.0 }
 0x140   : > { %v3070_v2 = vpack.c.bf16 %v576_v58, %v574_v57  ;;  %v770_v3 = vmax.f32 %v761_v59, 0.0 }
 0x141   : > { %v3078_v4 = vpack.c.bf16 %v769_v62, %v767_v60  ;;  %v3068_v5 = vpack.c.bf16 %v577_v63, %v575_v61 }
 0x142   : > { %v3076_v7 = vpack.c.bf16 %v770_v3, %v768_v1 }
 0x143   : > { %3069 = vmatprep.subr.bf16.mxu0 %v3068_v5 }
 0x144   : > { %3077 = vmatprep.subr.bf16.mxu1 %v3076_v7  ;;  %3071 = vmatpush1.bf16.msra.mxu0 %v3070_v2 }
 0x145   : > { %3079 = vmatpush1.bf16.msra.mxu1 %v3078_v4 }
 0x147   : > { %2772 = vmatmul.mubr.msk.f32.vlgmr.msra.gmra.mrb[8].mxu0 %vm799_vm2, %v771_v8 }
 0x148   : > { %2776 = vmatmul.mubr.msk.f32.vlgmr.msra.gmra.mrb[8].mxu1 %vm799_vm2, %v771_v8  ;;  %882 = vmatprep.mubr.f32.mxu0 %v3316_v9 }
 0x149   : > { %979 = vmatprep.mubr.f32.mxu1 %v3316_v9 }
 0x14b   : > { %2773 = vmatmul.mubr.msk.f32.gmra.mrb[10].mxu0 %vm799_vm2, %v772_v6 }
 0x14c   : > { %2777 = vmatmul.mubr.msk.f32.gmra.mrb[10].mxu1 %vm799_vm2, %v772_v6  ;;  %888 = vmatprep.mubr.f32.mxu0 %v3316_v9  ;;  %v2780_v6 = vld [vmem:[%s3936_s3 + $0x20] sm:$0xff] }
 0x14d   : > { %985 = vmatprep.mubr.f32.mxu1 %v3316_v9 }
 0x14f   : > { %2774 = vmatmul.mubr.msk.f32.gmra.mrb[12].mxu0 %vm799_vm2, %v773_v0 }
 0x150   : > { %2778 = vmatmul.mubr.msk.f32.gmra.mrb[12].mxu1 %vm799_vm2, %v773_v0  ;;  %894 = vmatprep.mubr.f32.mxu0 %v3316_v9  ;;  %v2781_v0 = vld [vmem:[%s3936_s3 + $0x28] sm:$0xff] }
 0x151   : > { %991 = vmatprep.mubr.f32.mxu1 %v3316_v9 }
 0x153   : > { %2775 = vmatmul.mubr.msk.f32.gmra.mrb[14].mxu0 %vm799_vm2, %v774_v10 }
 0x154   : > { %2779 = vmatmul.mubr.msk.f32.gmra.mrb[14].mxu1 %vm799_vm2, %v774_v10  ;;  %1112 = vmatprep.mubr.f32.mxu0 %v3316_v9  ;;  %v2782_v10 = vld [vmem:[%s3936_s3 + $0x30] sm:$0xff] }
 0x155   : > { %1209 = vmatprep.mubr.f32.mxu1 %v3316_v9 }
 0x21a   : > { %v878_v11 = vpop.f32.mrb[8].mxu0 }
 0x21b   : > { %v975_v12 = vpop.f32.mrb[8].mxu1  ;;  %v880_v13 = vpop.f32.mrb[9].mxu0  ;;  %v879_v16 = vadd.f32 %v878_v11, %v782_v14  ;;  %v2783_v11 = vld [vmem:[%s3936_s3 + $0x38] sm:$0xff] }
 0x21c   : > { %v977_v15 = vpop.f32.mrb[9].mxu1  ;;  %v976_v18 = vadd.f32 %v975_v12, %v782_v14  ;;  %v881_v19 = vadd.f32 %v880_v13, %v782_v14 }
 0x21d   : > { %v978_v21 = vadd.f32 %v977_v15, %v782_v14  ;;  %v901_v28 = vmax.f32 %v879_v16, 0.0  ;;  %v1019_v15 = vpop.permute.xlu0 %1018 }
 0x21e   : > { %v884_v20 = vpop.f32.mrb[10].mxu0  ;;  %v998_v31 = vmax.f32 %v976_v18, 0.0  ;;  %v902_v32 = vmax.f32 %v881_v19, 0.0  ;;  %v1024_v18 = vpop.permute.xlu1 %1023 }
 0x21f   : > { %v885_v22 = vadd.f32 %v884_v20, %v787_v17  ;;  %v981_v23 = vpop.f32.mrb[10].mxu1  ;;  %v886_v24 = vpop.f32.mrb[11].mxu0  ;;  %v999_v36 = vmax.f32 %v978_v21, 0.0 }
 0x220   : > { %v982_v25 = vadd.f32 %v981_v23, %v787_v17  ;;  %v887_v26 = vadd.f32 %v886_v24, %v787_v17  ;;  %v983_v27 = vpop.f32.mrb[11].mxu1 }
 0x221   : > { %v903_v29 = vmax.f32 %v885_v22, 0.0  ;;  %v984_v30 = vadd.f32 %v983_v27, %v787_v17 }
 0x222   : > { %v1000_v33 = vmax.f32 %v982_v25, 0.0  ;;  %v904_v34 = vmax.f32 %v887_v26, 0.0  ;;  %v890_v35 = vpop.f32.mrb[12].mxu0 }
 0x223   : > { %v3082_v37 = vpack.c.bf16 %v903_v29, %v901_v28  ;;  %v1001_v38 = vmax.f32 %v984_v30, 0.0  ;;  %v987_v39 = vpop.f32.mrb[12].mxu1  ;;  %v892_v40 = vpop.f32.mrb[13].mxu0  ;;  %v891_v46 = vadd.f32 %v890_v35, %v792_v41 }
 0x224   : > { %v3090_v42 = vpack.c.bf16 %v1000_v33, %v998_v31  ;;  %v3080_v43 = vpack.c.bf16 %v904_v34, %v902_v32  ;;  %v989_v44 = vpop.f32.mrb[13].mxu1  ;;  %v988_v48 = vadd.f32 %v987_v39, %v792_v41  ;;  %v893_v49 = vadd.f32 %v892_v40, %v792_v41 }
 0x225   : > { %v3088_v45 = vpack.c.bf16 %v1001_v38, %v999_v36  ;;  %v990_v51 = vadd.f32 %v989_v44, %v792_v41  ;;  %v905_v58 = vmax.f32 %v891_v46, 0.0 }
 0x226   : > { %v896_v50 = vpop.f32.mrb[14].mxu0  ;;  %3081 = vmatprep.subr.bf16.mxu0 %v3080_v43  ;;  %v1002_v61 = vmax.f32 %v988_v48, 0.0  ;;  %v906_v62 = vmax.f32 %v893_v49, 0.0  ;;  %v1034_v48 = vpop.permute.xlu1 %1033 }
 0x227   : > { %v897_v52 = vadd.f32 %v896_v50, %v797_v47  ;;  %v993_v53 = vpop.f32.mrb[14].mxu1  ;;  %3089 = vmatprep.subr.bf16.mxu1 %v3088_v45  ;;  %v898_v54 = vpop.f32.mrb[15].mxu0  ;;  %3083 = vmatpush1.bf16.msra.mxu0 %v3082_v37  ;;  %v1003_v2 = vmax.f32 %v990_v51, 0.0 }
 0x228   : > { %v994_v55 = vadd.f32 %v993_v53, %v797_v47  ;;  %v899_v56 = vadd.f32 %v898_v54, %v797_v47  ;;  %v995_v57 = vpop.f32.mrb[15].mxu1  ;;  %3091 = vmatpush1.bf16.msra.mxu1 %v3090_v42  ;;  %v1029_v42 = vpop.permute.xlu0 %1028 }
 0x229   : > { %v907_v59 = vmax.f32 %v897_v52, 0.0  ;;  %v996_v60 = vadd.f32 %v995_v57, %v797_v47 }
 0x22a   : > { %v1004_v63 = vmax.f32 %v994_v55, 0.0  ;;  %v908_v1 = vmax.f32 %v899_v56, 0.0 }
 0x22b   : > { %v3086_v3 = vpack.c.bf16 %v907_v59, %v905_v58  ;;  %v1005_v4 = vmax.f32 %v996_v60, 0.0 }
 0x22c   : > { %v3094_v5 = vpack.c.bf16 %v1004_v63, %v1002_v61  ;;  %v3084_v7 = vpack.c.bf16 %v908_v1, %v906_v62 }
 0x22d   : > { %v3092_v8 = vpack.c.bf16 %v1005_v4, %v1003_v2 }
 0x22e   : > { %3085 = vmatprep.subr.bf16.mxu0 %v3084_v7 }
 0x22f   : > { %3093 = vmatprep.subr.bf16.mxu1 %v3092_v8  ;;  %3087 = vmatpush1.bf16.msra.mxu0 %v3086_v3 }
 0x230   : > { %3095 = vmatpush1.bf16.msra.mxu1 %v3094_v5 }
 0x232   : > { %2788 = vmatmul.mubr.msk.f32.vlgmr.msra.gmra.mrb[16].mxu0 %vm799_vm2, %v2780_v6 }
 0x233   : > { %2792 = vmatmul.mubr.msk.f32.vlgmr.msra.gmra.mrb[16].mxu1 %vm799_vm2, %v2780_v6  ;;  %1118 = vmatprep.mubr.f32.mxu0 %v3316_v9 }
 0x234   : > { %1215 = vmatprep.mubr.f32.mxu1 %v3316_v9 }
 0x236   : > { %2789 = vmatmul.mubr.msk.f32.gmra.mrb[18].mxu0 %vm799_vm2, %v2781_v0 }
 0x237   : > { %2793 = vmatmul.mubr.msk.f32.gmra.mrb[18].mxu1 %vm799_vm2, %v2781_v0  ;;  %1124 = vmatprep.mubr.f32.mxu0 %v3316_v9  ;;  %v2796_v0 = vld [vmem:[%s3936_s3 + $0x40] sm:$0xff] }
 0x238   : > { %1221 = vmatprep.mubr.f32.mxu1 %v3316_v9 }
 0x23a   : > { %2790 = vmatmul.mubr.msk.f32.gmra.mrb[20].mxu0 %vm799_vm2, %v2782_v10 }
 0x23b   : > { %2794 = vmatmul.mubr.msk.f32.gmra.mrb[20].mxu1 %vm799_vm2, %v2782_v10  ;;  %1130 = vmatprep.mubr.f32.mxu0 %v3316_v9  ;;  %v2797_v10 = vld [vmem:[%s3936_s3 + $0x48] sm:$0xff] }
 0x23c   : > { %1227 = vmatprep.mubr.f32.mxu1 %v3316_v9 }
 0x23e   : > { %2791 = vmatmul.mubr.msk.f32.gmra.mrb[22].mxu0 %vm799_vm2, %v2783_v11 }
 0x23f   : > { %2795 = vmatmul.mubr.msk.f32.gmra.mrb[22].mxu1 %vm799_vm2, %v2783_v11  ;;  %1348 = vmatprep.mubr.f32.mxu0 %v3316_v9  ;;  %v2798_v11 = vld [vmem:[%s3936_s3 + $0x50] sm:$0xff] }
 0x240   : > { %1445 = vmatprep.mubr.f32.mxu1 %v3316_v9 }
 0x305   : > { %v1114_v12 = vpop.f32.mrb[16].mxu0 }
 0x306   : > { %v1211_v13 = vpop.f32.mrb[16].mxu1  ;;  %v1116_v14 = vpop.f32.mrb[17].mxu0  ;;  %v1115_v17 = vadd.f32 %v1114_v12, %v1019_v15  ;;  %v2799_v12 = vld [vmem:[%s3936_s3 + $0x58] sm:$0xff] }
 0x307   : > { %v1213_v16 = vpop.f32.mrb[17].mxu1  ;;  %v1212_v19 = vadd.f32 %v1211_v13, %v1019_v15  ;;  %v1117_v20 = vadd.f32 %v1116_v14, %v1019_v15 }
 0x308   : > { %v1214_v22 = vadd.f32 %v1213_v16, %v1019_v15  ;;  %v1137_v29 = vmax.f32 %v1115_v17, 0.0  ;;  %v1255_v16 = vpop.permute.xlu0 %1254 }
 0x309   : > { %v1120_v21 = vpop.f32.mrb[18].mxu0  ;;  %v1234_v32 = vmax.f32 %v1212_v19, 0.0  ;;  %v1138_v33 = vmax.f32 %v1117_v20, 0.0  ;;  %v1260_v19 = vpop.permute.xlu1 %1259 }
 0x30a   : > { %v1121_v23 = vadd.f32 %v1120_v21, %v1024_v18  ;;  %v1217_v24 = vpop.f32.mrb[18].mxu1  ;;  %v1122_v25 = vpop.f32.mrb[19].mxu0  ;;  %v1235_v37 = vmax.f32 %v1214_v22, 0.0 }
 0x30b   : > { %v1218_v26 = vadd.f32 %v1217_v24, %v1024_v18  ;;  %v1123_v27 = vadd.f32 %v1122_v25, %v1024_v18  ;;  %v1219_v28 = vpop.f32.mrb[19].mxu1 }
 0x30c   : > { %v1139_v30 = vmax.f32 %v1121_v23, 0.0  ;;  %v1220_v31 = vadd.f32 %v1219_v28, %v1024_v18 }
 0x30d   : > { %v1236_v34 = vmax.f32 %v1218_v26, 0.0  ;;  %v1140_v35 = vmax.f32 %v1123_v27, 0.0  ;;  %v1126_v36 = vpop.f32.mrb[20].mxu0 }
 0x30e   : > { %v3098_v38 = vpack.c.bf16 %v1139_v30, %v1137_v29  ;;  %v1237_v39 = vmax.f32 %v1220_v31, 0.0  ;;  %v1223_v40 = vpop.f32.mrb[20].mxu1  ;;  %v1128_v41 = vpop.f32.mrb[21].mxu0  ;;  %v1127_v47 = vadd.f32 %v1126_v36, %v1029_v42 }
 0x30f   : > { %v3106_v43 = vpack.c.bf16 %v1236_v34, %v1234_v32  ;;  %v3096_v44 = vpack.c.bf16 %v1140_v35, %v1138_v33  ;;  %v1225_v45 = vpop.f32.mrb[21].mxu1  ;;  %v1224_v49 = vadd.f32 %v1223_v40, %v1029_v42  ;;  %v1129_v50 = vadd.f32 %v1128_v41, %v1029_v42 }
 0x310   : > { %v3104_v46 = vpack.c.bf16 %v1237_v39, %v1235_v37  ;;  %v1226_v52 = vadd.f32 %v1225_v45, %v1029_v42  ;;  %v1141_v59 = vmax.f32 %v1127_v47, 0.0 }
 0x311   : > { %v1132_v51 = vpop.f32.mrb[22].mxu0  ;;  %3097 = vmatprep.subr.bf16.mxu0 %v3096_v44  ;;  %v1238_v62 = vmax.f32 %v1224_v49, 0.0  ;;  %v1142_v63 = vmax.f32 %v1129_v50, 0.0  ;;  %v1270_v49 = vpop.permute.xlu1 %1269 }
 0x312   : > { %v1133_v53 = vadd.f32 %v1132_v51, %v1034_v48  ;;  %v1229_v54 = vpop.f32.mrb[22].mxu1  ;;  %3105 = vmatprep.subr.bf16.mxu1 %v3104_v46  ;;  %v1134_v55 = vpop.f32.mrb[23].mxu0  ;;  %3099 = vmatpush1.bf16.msra.mxu0 %v3098_v38  ;;  %v1239_v3 = vmax.f32 %v1226_v52, 0.0 }
 0x313   : > { %v1230_v56 = vadd.f32 %v1229_v54, %v1034_v48  ;;  %v1135_v57 = vadd.f32 %v1134_v55, %v1034_v48  ;;  %v1231_v58 = vpop.f32.mrb[23].mxu1  ;;  %3107 = vmatpush1.bf16.msra.mxu1 %v3106_v43  ;;  %v1265_v43 = vpop.permute.xlu0 %1264 }
 0x314   : > { %v1143_v60 = vmax.f32 %v1133_v53, 0.0  ;;  %v1232_v61 = vadd.f32 %v1231_v58, %v1034_v48 }
 0x315   : > { %v1240_v1 = vmax.f32 %v1230_v56, 0.0  ;;  %v1144_v2 = vmax.f32 %v1135_v57, 0.0 }
 0x316   : > { %v3102_v4 = vpack.c.bf16 %v1143_v60, %v1141_v59  ;;  %v1241_v5 = vmax.f32 %v1232_v61, 0.0 }
 0x317   : > { %v3110_v7 = vpack.c.bf16 %v1240_v1, %v1238_v62  ;;  %v3100_v8 = vpack.c.bf16 %v1144_v2, %v1142_v63 }
 0x318   : > { %v3108_v6 = vpack.c.bf16 %v1241_v5, %v1239_v3 }
 0x319   : > { %3101 = vmatprep.subr.bf16.mxu0 %v3100_v8 }
 0x31a   : > { %3109 = vmatprep.subr.bf16.mxu1 %v3108_v6  ;;  %3103 = vmatpush1.bf16.msra.mxu0 %v3102_v4 }
 0x31b   : > { %3111 = vmatpush1.bf16.msra.mxu1 %v3110_v7 }
 0x31d   : > { %2804 = vmatmul.mubr.msk.f32.vlgmr.msra.gmra.mrb[24].mxu0 %vm799_vm2, %v2796_v0 }
 0x31e   : > { %2808 = vmatmul.mubr.msk.f32.vlgmr.msra.gmra.mrb[24].mxu1 %vm799_vm2, %v2796_v0  ;;  %1354 = vmatprep.mubr.f32.mxu0 %v3316_v9 }
 0x31f   : > { %1451 = vmatprep.mubr.f32.mxu1 %v3316_v9 }
 0x321   : > { %2805 = vmatmul.mubr.msk.f32.gmra.mrb[26].mxu0 %vm799_vm2, %v2797_v10 }
 0x322   : > { %2809 = vmatmul.mubr.msk.f32.gmra.mrb[26].mxu1 %vm799_vm2, %v2797_v10  ;;  %1360 = vmatprep.mubr.f32.mxu0 %v3316_v9  ;;  %v2812_v10 = vld [vmem:[%s3936_s3 + $0x60] sm:$0xff] }
 0x323   : > { %1457 = vmatprep.mubr.f32.mxu1 %v3316_v9 }
 0x325   : > { %2806 = vmatmul.mubr.msk.f32.gmra.mrb[28].mxu0 %vm799_vm2, %v2798_v11 }
 0x326   : > { %2810 = vmatmul.mubr.msk.f32.gmra.mrb[28].mxu1 %vm799_vm2, %v2798_v11  ;;  %1366 = vmatprep.mubr.f32.mxu0 %v3316_v9  ;;  %v2813_v11 = vld [vmem:[%s3936_s3 + $0x68] sm:$0xff] }
 0x327   : > { %1463 = vmatprep.mubr.f32.mxu1 %v3316_v9 }
 0x329   : > { %2807 = vmatmul.mubr.msk.f32.gmra.mrb[30].mxu0 %vm799_vm2, %v2799_v12 }
 0x32a   : > { %2811 = vmatmul.mubr.msk.f32.gmra.mrb[30].mxu1 %vm799_vm2, %v2799_v12  ;;  %1584 = vmatprep.mubr.f32.mxu0 %v3316_v9  ;;  %v2814_v12 = vld [vmem:[%s3936_s3 + $0x70] sm:$0xff] }
 0x32b   : > { %1681 = vmatprep.mubr.f32.mxu1 %v3316_v9 }
 0x3f0   : > { %v1350_v13 = vpop.f32.mrb[24].mxu0 }
 0x3f1   : > { %v1447_v14 = vpop.f32.mrb[24].mxu1  ;;  %v1352_v15 = vpop.f32.mrb[25].mxu0  ;;  %v1351_v18 = vadd.f32 %v1350_v13, %v1255_v16  ;;  %v2815_v13 = vld [vmem:[%s3936_s3 + $0x78] sm:$0xff] }
 0x3f2   : > { %v1449_v17 = vpop.f32.mrb[25].mxu1  ;;  %v1448_v20 = vadd.f32 %v1447_v14, %v1255_v16  ;;  %v1353_v21 = vadd.f32 %v1352_v15, %v1255_v16 }
 0x3f3   : > { %v1450_v23 = vadd.f32 %v1449_v17, %v1255_v16  ;;  %v1373_v30 = vmax.f32 %v1351_v18, 0.0  ;;  %v1491_v17 = vpop.permute.xlu0 %1490 }
 0x3f4   : > { %v1356_v22 = vpop.f32.mrb[26].mxu0  ;;  %v1470_v33 = vmax.f32 %v1448_v20, 0.0  ;;  %v1374_v34 = vmax.f32 %v1353_v21, 0.0  ;;  %v1496_v20 = vpop.permute.xlu1 %1495 }
 0x3f5   : > { %v1357_v24 = vadd.f32 %v1356_v22, %v1260_v19  ;;  %v1453_v25 = vpop.f32.mrb[26].mxu1  ;;  %v1358_v26 = vpop.f32.mrb[27].mxu0  ;;  %v1471_v38 = vmax.f32 %v1450_v23, 0.0 }
 0x3f6   : > { %v1454_v27 = vadd.f32 %v1453_v25, %v1260_v19  ;;  %v1359_v28 = vadd.f32 %v1358_v26, %v1260_v19  ;;  %v1455_v29 = vpop.f32.mrb[27].mxu1 }
 0x3f7   : > { %v1375_v31 = vmax.f32 %v1357_v24, 0.0  ;;  %v1456_v32 = vadd.f32 %v1455_v29, %v1260_v19 }
 0x3f8   : > { %v1472_v35 = vmax.f32 %v1454_v27, 0.0  ;;  %v1376_v36 = vmax.f32 %v1359_v28, 0.0  ;;  %v1362_v37 = vpop.f32.mrb[28].mxu0 }
 0x3f9   : > { %v3114_v39 = vpack.c.bf16 %v1375_v31, %v1373_v30  ;;  %v1473_v40 = vmax.f32 %v1456_v32, 0.0  ;;  %v1459_v41 = vpop.f32.mrb[28].mxu1  ;;  %v1364_v42 = vpop.f32.mrb[29].mxu0  ;;  %v1363_v48 = vadd.f32 %v1362_v37, %v1265_v43 }
 0x3fa   : > { %v3122_v44 = vpack.c.bf16 %v1472_v35, %v1470_v33  ;;  %v3112_v45 = vpack.c.bf16 %v1376_v36, %v1374_v34  ;;  %v1461_v46 = vpop.f32.mrb[29].mxu1  ;;  %v1460_v50 = vadd.f32 %v1459_v41, %v1265_v43  ;;  %v1365_v51 = vadd.f32 %v1364_v42, %v1265_v43 }
 0x3fb   : > { %v3120_v47 = vpack.c.bf16 %v1473_v40, %v1471_v38  ;;  %v1462_v53 = vadd.f32 %v1461_v46, %v1265_v43  ;;  %v1377_v60 = vmax.f32 %v1363_v48, 0.0 }
 0x3fc   : > { %v1368_v52 = vpop.f32.mrb[30].mxu0  ;;  %3113 = vmatprep.subr.bf16.mxu0 %v3112_v45  ;;  %v1474_v63 = vmax.f32 %v1460_v50, 0.0  ;;  %v1378_v1 = vmax.f32 %v1365_v51, 0.0  ;;  %v1506_v50 = vpop.permute.xlu1 %1505 }
 0x3fd   : > { %v1369_v54 = vadd.f32 %v1368_v52, %v1270_v49  ;;  %v1465_v55 = vpop.f32.mrb[30].mxu1  ;;  %3121 = vmatprep.subr.bf16.mxu1 %v3120_v47  ;;  %v1370_v56 = vpop.f32.mrb[31].mxu0  ;;  %3115 = vmatpush1.bf16.msra.mxu0 %v3114_v39  ;;  %v1475_v4 = vmax.f32 %v1462_v53, 0.0 }
 0x3fe   : > { %v1466_v57 = vadd.f32 %v1465_v55, %v1270_v49  ;;  %v1371_v58 = vadd.f32 %v1370_v56, %v1270_v49  ;;  %v1467_v59 = vpop.f32.mrb[31].mxu1  ;;  %3123 = vmatpush1.bf16.msra.mxu1 %v3122_v44  ;;  %v1501_v44 = vpop.permute.xlu0 %1500 }
 0x3ff   : > { %v1379_v61 = vmax.f32 %v1369_v54, 0.0  ;;  %v1468_v62 = vadd.f32 %v1467_v59, %v1270_v49 }
 0x400   : > { %v1476_v2 = vmax.f32 %v1466_v57, 0.0  ;;  %v1380_v3 = vmax.f32 %v1371_v58, 0.0 }
 0x401   : > { %v3118_v5 = vpack.c.bf16 %v1379_v61, %v1377_v60  ;;  %v1477_v7 = vmax.f32 %v1468_v62, 0.0 }
 0x402   : > { %v3126_v8 = vpack.c.bf16 %v1476_v2, %v1474_v63  ;;  %v3116_v6 = vpack.c.bf16 %v1380_v3, %v1378_v1 }
 0x403   : > { %v3124_v0 = vpack.c.bf16 %v1477_v7, %v1475_v4 }
 0x404   : > { %3117 = vmatprep.subr.bf16.mxu0 %v3116_v6 }
 0x405   : > { %3125 = vmatprep.subr.bf16.mxu1 %v3124_v0  ;;  %3119 = vmatpush1.bf16.msra.mxu0 %v3118_v5 }
 0x406   : > { %3127 = vmatpush1.bf16.msra.mxu1 %v3126_v8 }
 0x408   : > { %2820 = vmatmul.mubr.msk.f32.vlgmr.msra.gmra.mrb[32].mxu0 %vm799_vm2, %v2812_v10 }
 0x409   : > { %2824 = vmatmul.mubr.msk.f32.vlgmr.msra.gmra.mrb[32].mxu1 %vm799_vm2, %v2812_v10  ;;  %1590 = vmatprep.mubr.f32.mxu0 %v3316_v9 }
 0x40a   : > { %1687 = vmatprep.mubr.f32.mxu1 %v3316_v9 }
 0x40c   : > { %2821 = vmatmul.mubr.msk.f32.gmra.mrb[34].mxu0 %vm799_vm2, %v2813_v11 }
 0x40d   : > { %2825 = vmatmul.mubr.msk.f32.gmra.mrb[34].mxu1 %vm799_vm2, %v2813_v11  ;;  %1596 = vmatprep.mubr.f32.mxu0 %v3316_v9  ;;  %v2828_v11 = vld [vmem:[%s3936_s3 + $0x80] sm:$0xff] }
 0x40e   : > { %1693 = vmatprep.mubr.f32.mxu1 %v3316_v9 }
 0x410   : > { %2822 = vmatmul.mubr.msk.f32.gmra.mrb[36].mxu0 %vm799_vm2, %v2814_v12 }
 0x411   : > { %2826 = vmatmul.mubr.msk.f32.gmra.mrb[36].mxu1 %vm799_vm2, %v2814_v12  ;;  %1602 = vmatprep.mubr.f32.mxu0 %v3316_v9  ;;  %v2829_v12 = vld [vmem:[%s3936_s3 + $0x88] sm:$0xff] }
 0x412   : > { %1699 = vmatprep.mubr.f32.mxu1 %v3316_v9 }
 0x414   : > { %2823 = vmatmul.mubr.msk.f32.gmra.mrb[38].mxu0 %vm799_vm2, %v2815_v13 }
 0x415   : > { %2827 = vmatmul.mubr.msk.f32.gmra.mrb[38].mxu1 %vm799_vm2, %v2815_v13  ;;  %1820 = vmatprep.mubr.f32.mxu0 %v3316_v9  ;;  %v2830_v13 = vld [vmem:[%s3936_s3 + $0x90] sm:$0xff] }
 0x416   : > { %1917 = vmatprep.mubr.f32.mxu1 %v3316_v9 }
 0x4db   : > { %v1586_v14 = vpop.f32.mrb[32].mxu0 }
 0x4dc   : > { %v1683_v15 = vpop.f32.mrb[32].mxu1  ;;  %v1588_v16 = vpop.f32.mrb[33].mxu0  ;;  %v1587_v19 = vadd.f32 %v1586_v14, %v1491_v17  ;;  %v2831_v14 = vld [vmem:[%s3936_s3 + $0x98] sm:$0xff] }
 0x4dd   : > { %v1685_v18 = vpop.f32.mrb[33].mxu1  ;;  %v1684_v21 = vadd.f32 %v1683_v15, %v1491_v17  ;;  %v1589_v22 = vadd.f32 %v1588_v16, %v1491_v17 }
 0x4de   : > { %v1686_v24 = vadd.f32 %v1685_v18, %v1491_v17  ;;  %v1609_v31 = vmax.f32 %v1587_v19, 0.0  ;;  %v1727_v18 = vpop.permute.xlu0 %1726 }
 0x4df   : > { %v1592_v23 = vpop.f32.mrb[34].mxu0  ;;  %v1706_v34 = vmax.f32 %v1684_v21, 0.0  ;;  %v1610_v35 = vmax.f32 %v1589_v22, 0.0  ;;  %v1732_v21 = vpop.permute.xlu1 %1731 }
 0x4e0   : > { %v1593_v25 = vadd.f32 %v1592_v23, %v1496_v20  ;;  %v1689_v26 = vpop.f32.mrb[34].mxu1  ;;  %v1594_v27 = vpop.f32.mrb[35].mxu0  ;;  %v1707_v39 = vmax.f32 %v1686_v24, 0.0 }
 0x4e1   : > { %v1690_v28 = vadd.f32 %v1689_v26, %v1496_v20  ;;  %v1595_v29 = vadd.f32 %v1594_v27, %v1496_v20  ;;  %v1691_v30 = vpop.f32.mrb[35].mxu1 }
 0x4e2   : > { %v1611_v32 = vmax.f32 %v1593_v25, 0.0  ;;  %v1692_v33 = vadd.f32 %v1691_v30, %v1496_v20 }
 0x4e3   : > { %v1708_v36 = vmax.f32 %v1690_v28, 0.0  ;;  %v1612_v37 = vmax.f32 %v1595_v29, 0.0  ;;  %v1598_v38 = vpop.f32.mrb[36].mxu0 }
 0x4e4   : > { %v3130_v40 = vpack.c.bf16 %v1611_v32, %v1609_v31  ;;  %v1709_v41 = vmax.f32 %v1692_v33, 0.0  ;;  %v1695_v42 = vpop.f32.mrb[36].mxu1  ;;  %v1600_v43 = vpop.f32.mrb[37].mxu0  ;;  %v1599_v49 = vadd.f32 %v1598_v38, %v1501_v44 }
 0x4e5   : > { %v3138_v45 = vpack.c.bf16 %v1708_v36, %v1706_v34  ;;  %v3128_v46 = vpack.c.bf16 %v1612_v37, %v1610_v35  ;;  %v1697_v47 = vpop.f32.mrb[37].mxu1  ;;  %v1696_v51 = vadd.f32 %v1695_v42, %v1501_v44  ;;  %v1601_v52 = vadd.f32 %v1600_v43, %v1501_v44 }
 0x4e6   : > { %v3136_v48 = vpack.c.bf16 %v1709_v41, %v1707_v39  ;;  %v1698_v54 = vadd.f32 %v1697_v47, %v1501_v44  ;;  %v1613_v61 = vmax.f32 %v1599_v49, 0.0 }
 0x4e7   : > { %v1604_v53 = vpop.f32.mrb[38].mxu0  ;;  %3129 = vmatprep.subr.bf16.mxu0 %v3128_v46  ;;  %v1710_v1 = vmax.f32 %v1696_v51, 0.0  ;;  %v1614_v2 = vmax.f32 %v1601_v52, 0.0  ;;  %v1742_v51 = vpop.permute.xlu1 %1741 }
 0x4e8   : > { %v1605_v55 = vadd.f32 %v1604_v53, %v1506_v50  ;;  %v1701_v56 = vpop.f32.mrb[38].mxu1  ;;  %3137 = vmatprep.subr.bf16.mxu1 %v3136_v48  ;;  %v1606_v57 = vpop.f32.mrb[39].mxu0  ;;  %3131 = vmatpush1.bf16.msra.mxu0 %v3130_v40  ;;  %v1711_v5 = vmax.f32 %v1698_v54, 0.0 }
 0x4e9   : > { %v1702_v58 = vadd.f32 %v1701_v56, %v1506_v50  ;;  %v1607_v59 = vadd.f32 %v1606_v57, %v1506_v50  ;;  %v1703_v60 = vpop.f32.mrb[39].mxu1  ;;  %3139 = vmatpush1.bf16.msra.mxu1 %v3138_v45  ;;  %v1737_v45 = vpop.permute.xlu0 %1736 }
 0x4ea   : > { %v1615_v62 = vmax.f32 %v1605_v55, 0.0  ;;  %v1704_v63 = vadd.f32 %v1703_v60, %v1506_v50 }
 0x4eb   : > { %v1712_v3 = vmax.f32 %v1702_v58, 0.0  ;;  %v1616_v4 = vmax.f32 %v1607_v59, 0.0 }
 0x4ec   : > { %v3134_v7 = vpack.c.bf16 %v1615_v62, %v1613_v61  ;;  %v1713_v8 = vmax.f32 %v1704_v63, 0.0 }
 0x4ed   : > { %v3142_v6 = vpack.c.bf16 %v1712_v3, %v1710_v1  ;;  %v3132_v0 = vpack.c.bf16 %v1616_v4, %v1614_v2 }
 0x4ee   : > { %v3140_v10 = vpack.c.bf16 %v1713_v8, %v1711_v5 }
 0x4ef   : > { %3133 = vmatprep.subr.bf16.mxu0 %v3132_v0 }
 0x4f0   : > { %3141 = vmatprep.subr.bf16.mxu1 %v3140_v10  ;;  %3135 = vmatpush1.bf16.msra.mxu0 %v3134_v7 }
 0x4f1   : > { %3143 = vmatpush1.bf16.msra.mxu1 %v3142_v6 }
 0x4f3   : > { %2836 = vmatmul.mubr.msk.f32.vlgmr.msra.gmra.mrb[40].mxu0 %vm799_vm2, %v2828_v11 }
 0x4f4   : > { %2840 = vmatmul.mubr.msk.f32.vlgmr.msra.gmra.mrb[40].mxu1 %vm799_vm2, %v2828_v11  ;;  %1826 = vmatprep.mubr.f32.mxu0 %v3316_v9 }
 0x4f5   : > { %1923 = vmatprep.mubr.f32.mxu1 %v3316_v9 }
 0x4f7   : > { %2837 = vmatmul.mubr.msk.f32.gmra.mrb[42].mxu0 %vm799_vm2, %v2829_v12 }
 0x4f8   : > { %2841 = vmatmul.mubr.msk.f32.gmra.mrb[42].mxu1 %vm799_vm2, %v2829_v12  ;;  %1832 = vmatprep.mubr.f32.mxu0 %v3316_v9  ;;  %v2844_v12 = vld [vmem:[%s3936_s3 + $0xa0] sm:$0xff] }
 0x4f9   : > { %1929 = vmatprep.mubr.f32.mxu1 %v3316_v9 }
 0x4fb   : > { %2838 = vmatmul.mubr.msk.f32.gmra.mrb[44].mxu0 %vm799_vm2, %v2830_v13 }
 0x4fc   : > { %2842 = vmatmul.mubr.msk.f32.gmra.mrb[44].mxu1 %vm799_vm2, %v2830_v13  ;;  %1838 = vmatprep.mubr.f32.mxu0 %v3316_v9  ;;  %v2845_v13 = vld [vmem:[%s3936_s3 + $0xa8] sm:$0xff] }
 0x4fd   : > { %1935 = vmatprep.mubr.f32.mxu1 %v3316_v9 }
 0x4ff   : > { %2839 = vmatmul.mubr.msk.f32.gmra.mrb[46].mxu0 %vm799_vm2, %v2831_v14 }
 0x500   : > { %2843 = vmatmul.mubr.msk.f32.gmra.mrb[46].mxu1 %vm799_vm2, %v2831_v14  ;;  %2056 = vmatprep.mubr.f32.mxu0 %v3316_v9  ;;  %v2846_v14 = vld [vmem:[%s3936_s3 + $0xb0] sm:$0xff] }
 0x501   : > { %2153 = vmatprep.mubr.f32.mxu1 %v3316_v9 }
 0x5c6   : > { %v1822_v15 = vpop.f32.mrb[40].mxu0 }
 0x5c7   : > { %v1919_v16 = vpop.f32.mrb[40].mxu1  ;;  %v1824_v17 = vpop.f32.mrb[41].mxu0  ;;  %v1823_v20 = vadd.f32 %v1822_v15, %v1727_v18  ;;  %v2847_v15 = vld [vmem:[%s3936_s3 + $0xb8] sm:$0xff] }
 0x5c8   : > { %v1921_v19 = vpop.f32.mrb[41].mxu1  ;;  %v1920_v22 = vadd.f32 %v1919_v16, %v1727_v18  ;;  %v1825_v23 = vadd.f32 %v1824_v17, %v1727_v18 }
 0x5c9   : > { %v1922_v25 = vadd.f32 %v1921_v19, %v1727_v18  ;;  %v1845_v32 = vmax.f32 %v1823_v20, 0.0  ;;  %v1963_v19 = vpop.permute.xlu0 %1962 }
 0x5ca   : > { %v1828_v24 = vpop.f32.mrb[42].mxu0  ;;  %v1942_v35 = vmax.f32 %v1920_v22, 0.0  ;;  %v1846_v36 = vmax.f32 %v1825_v23, 0.0  ;;  %v1968_v22 = vpop.permute.xlu1 %1967 }
 0x5cb   : > { %v1829_v26 = vadd.f32 %v1828_v24, %v1732_v21  ;;  %v1925_v27 = vpop.f32.mrb[42].mxu1  ;;  %v1830_v28 = vpop.f32.mrb[43].mxu0  ;;  %v1943_v40 = vmax.f32 %v1922_v25, 0.0 }
 0x5cc   : > { %v1926_v29 = vadd.f32 %v1925_v27, %v1732_v21  ;;  %v1831_v30 = vadd.f32 %v1830_v28, %v1732_v21  ;;  %v1927_v31 = vpop.f32.mrb[43].mxu1 }
 0x5cd   : > { %v1847_v33 = vmax.f32 %v1829_v26, 0.0  ;;  %v1928_v34 = vadd.f32 %v1927_v31, %v1732_v21 }
 0x5ce   : > { %v1944_v37 = vmax.f32 %v1926_v29, 0.0  ;;  %v1848_v38 = vmax.f32 %v1831_v30, 0.0  ;;  %v1834_v39 = vpop.f32.mrb[44].mxu0 }
 0x5cf   : > { %v3146_v41 = vpack.c.bf16 %v1847_v33, %v1845_v32  ;;  %v1945_v42 = vmax.f32 %v1928_v34, 0.0  ;;  %v1931_v43 = vpop.f32.mrb[44].mxu1  ;;  %v1836_v44 = vpop.f32.mrb[45].mxu0  ;;  %v1835_v50 = vadd.f32 %v1834_v39, %v1737_v45 }
 0x5d0   : > { %v3154_v46 = vpack.c.bf16 %v1944_v37, %v1942_v35  ;;  %v3144_v47 = vpack.c.bf16 %v1848_v38, %v1846_v36  ;;  %v1933_v48 = vpop.f32.mrb[45].mxu1  ;;  %v1932_v52 = vadd.f32 %v1931_v43, %v1737_v45  ;;  %v1837_v53 = vadd.f32 %v1836_v44, %v1737_v45 }
 0x5d1   : > { %v3152_v49 = vpack.c.bf16 %v1945_v42, %v1943_v40  ;;  %v1934_v55 = vadd.f32 %v1933_v48, %v1737_v45  ;;  %v1849_v62 = vmax.f32 %v1835_v50, 0.0 }
 0x5d2   : > { %v1840_v54 = vpop.f32.mrb[46].mxu0  ;;  %3145 = vmatprep.subr.bf16.mxu0 %v3144_v47  ;;  %v1946_v2 = vmax.f32 %v1932_v52, 0.0  ;;  %v1850_v3 = vmax.f32 %v1837_v53, 0.0  ;;  %v1978_v52 = vpop.permute.xlu1 %1977 }
 0x5d3   : > { %v1841_v56 = vadd.f32 %v1840_v54, %v1742_v51  ;;  %v1937_v57 = vpop.f32.mrb[46].mxu1  ;;  %3153 = vmatprep.subr.bf16.mxu1 %v3152_v49  ;;  %v1842_v58 = vpop.f32.mrb[47].mxu0  ;;  %3147 = vmatpush1.bf16.msra.mxu0 %v3146_v41  ;;  %v1947_v7 = vmax.f32 %v1934_v55, 0.0 }
 0x5d4   : > { %v1938_v59 = vadd.f32 %v1937_v57, %v1742_v51  ;;  %v1843_v60 = vadd.f32 %v1842_v58, %v1742_v51  ;;  %v1939_v61 = vpop.f32.mrb[47].mxu1  ;;  %3155 = vmatpush1.bf16.msra.mxu1 %v3154_v46  ;;  %v1973_v46 = vpop.permute.xlu0 %1972 }
 0x5d5   : > { %v1851_v63 = vmax.f32 %v1841_v56, 0.0  ;;  %v1940_v1 = vadd.f32 %v1939_v61, %v1742_v51 }
 0x5d6   : > { %v1948_v4 = vmax.f32 %v1938_v59, 0.0  ;;  %v1852_v5 = vmax.f32 %v1843_v60, 0.0 }
 0x5d7   : > { %v3150_v8 = vpack.c.bf16 %v1851_v63, %v1849_v62  ;;  %v1949_v6 = vmax.f32 %v1940_v1, 0.0 }
 0x5d8   : > { %v3158_v0 = vpack.c.bf16 %v1948_v4, %v1946_v2  ;;  %v3148_v10 = vpack.c.bf16 %v1852_v5, %v1850_v3 }
 0x5d9   : > { %v3156_v11 = vpack.c.bf16 %v1949_v6, %v1947_v7 }
 0x5da   : > { %3149 = vmatprep.subr.bf16.mxu0 %v3148_v10 }
 0x5db   : > { %3157 = vmatprep.subr.bf16.mxu1 %v3156_v11  ;;  %3151 = vmatpush1.bf16.msra.mxu0 %v3150_v8 }
 0x5dc   : > { %3159 = vmatpush1.bf16.msra.mxu1 %v3158_v0 }
 0x5de   : > { %2852 = vmatmul.mubr.msk.f32.vlgmr.msra.gmra.mrb[48].mxu0 %vm799_vm2, %v2844_v12 }
 0x5df   : > { %2856 = vmatmul.mubr.msk.f32.vlgmr.msra.gmra.mrb[48].mxu1 %vm799_vm2, %v2844_v12  ;;  %2062 = vmatprep.mubr.f32.mxu0 %v3316_v9 }
 0x5e0   : > { %2159 = vmatprep.mubr.f32.mxu1 %v3316_v9 }
 0x5e2   : > { %2853 = vmatmul.mubr.msk.f32.gmra.mrb[50].mxu0 %vm799_vm2, %v2845_v13 }
 0x5e3   : > { %2857 = vmatmul.mubr.msk.f32.gmra.mrb[50].mxu1 %vm799_vm2, %v2845_v13  ;;  %2068 = vmatprep.mubr.f32.mxu0 %v3316_v9  ;;  %v2860_v13 = vld [vmem:[%s3936_s3 + $0xc0] sm:$0xff] }
 0x5e4   : > { %2165 = vmatprep.mubr.f32.mxu1 %v3316_v9 }
 0x5e6   : > { %2854 = vmatmul.mubr.msk.f32.gmra.mrb[52].mxu0 %vm799_vm2, %v2846_v14 }
 0x5e7   : > { %2858 = vmatmul.mubr.msk.f32.gmra.mrb[52].mxu1 %vm799_vm2, %v2846_v14  ;;  %2074 = vmatprep.mubr.f32.mxu0 %v3316_v9  ;;  %v2861_v14 = vld [vmem:[%s3936_s3 + $0xc8] sm:$0xff] }
 0x5e8   : > { %2171 = vmatprep.mubr.f32.mxu1 %v3316_v9 }
 0x5ea   : > { %2855 = vmatmul.mubr.msk.f32.gmra.mrb[54].mxu0 %vm799_vm2, %v2847_v15 }
 0x5eb   : > { %2859 = vmatmul.mubr.msk.f32.gmra.mrb[54].mxu1 %vm799_vm2, %v2847_v15  ;;  %2292 = vmatprep.mubr.f32.mxu0 %v3316_v9  ;;  %v2862_v15 = vld [vmem:[%s3936_s3 + $0xd0] sm:$0xff] }
 0x5ec   : > { %2389 = vmatprep.mubr.f32.mxu1 %v3316_v9 }
 0x6b1   : > { %v2058_v16 = vpop.f32.mrb[48].mxu0 }
 0x6b2   : > { %v2155_v17 = vpop.f32.mrb[48].mxu1  ;;  %v2060_v18 = vpop.f32.mrb[49].mxu0  ;;  %v2059_v21 = vadd.f32 %v2058_v16, %v1963_v19  ;;  %v2863_v16 = vld [vmem:[%s3936_s3 + $0xd8] sm:$0xff] }
 0x6b3   : > { %v2157_v20 = vpop.f32.mrb[49].mxu1  ;;  %v2156_v23 = vadd.f32 %v2155_v17, %v1963_v19  ;;  %v2061_v24 = vadd.f32 %v2060_v18, %v1963_v19 }
 0x6b4   : > { %v2158_v26 = vadd.f32 %v2157_v20, %v1963_v19  ;;  %v2081_v33 = vmax.f32 %v2059_v21, 0.0  ;;  %v2199_v20 = vpop.permute.xlu0 %2198 }
 0x6b5   : > { %v2064_v25 = vpop.f32.mrb[50].mxu0  ;;  %v2178_v36 = vmax.f32 %v2156_v23, 0.0  ;;  %v2082_v37 = vmax.f32 %v2061_v24, 0.0  ;;  %v2204_v23 = vpop.permute.xlu1 %2203 }
 0x6b6   : > { %v2065_v27 = vadd.f32 %v2064_v25, %v1968_v22  ;;  %v2161_v28 = vpop.f32.mrb[50].mxu1  ;;  %v2066_v29 = vpop.f32.mrb[51].mxu0  ;;  %v2179_v41 = vmax.f32 %v2158_v26, 0.0 }
 0x6b7   : > { %v2162_v30 = vadd.f32 %v2161_v28, %v1968_v22  ;;  %v2067_v31 = vadd.f32 %v2066_v29, %v1968_v22  ;;  %v2163_v32 = vpop.f32.mrb[51].mxu1 }
 0x6b8   : > { %v2083_v34 = vmax.f32 %v2065_v27, 0.0  ;;  %v2164_v35 = vadd.f32 %v2163_v32, %v1968_v22 }
 0x6b9   : > { %v2180_v38 = vmax.f32 %v2162_v30, 0.0  ;;  %v2084_v39 = vmax.f32 %v2067_v31, 0.0  ;;  %v2070_v40 = vpop.f32.mrb[52].mxu0 }
 0x6ba   : > { %v3162_v42 = vpack.c.bf16 %v2083_v34, %v2081_v33  ;;  %v2181_v43 = vmax.f32 %v2164_v35, 0.0  ;;  %v2167_v44 = vpop.f32.mrb[52].mxu1  ;;  %v2072_v45 = vpop.f32.mrb[53].mxu0  ;;  %v2071_v51 = vadd.f32 %v2070_v40, %v1973_v46 }
 0x6bb   : > { %v3170_v47 = vpack.c.bf16 %v2180_v38, %v2178_v36  ;;  %v3160_v48 = vpack.c.bf16 %v2084_v39, %v2082_v37  ;;  %v2169_v49 = vpop.f32.mrb[53].mxu1  ;;  %v2168_v53 = vadd.f32 %v2167_v44, %v1973_v46  ;;  %v2073_v54 = vadd.f32 %v2072_v45, %v1973_v46 }
 0x6bc   : > { %v3168_v50 = vpack.c.bf16 %v2181_v43, %v2179_v41  ;;  %v2170_v56 = vadd.f32 %v2169_v49, %v1973_v46  ;;  %v2085_v63 = vmax.f32 %v2071_v51, 0.0  ;;  %v2209_v46 = vpop.permute.xlu0 %2208 }
 0x6bd   : > { %v2076_v55 = vpop.f32.mrb[54].mxu0  ;;  %3161 = vmatprep.subr.bf16.mxu0 %v3160_v48  ;;  %v2182_v3 = vmax.f32 %v2168_v53, 0.0  ;;  %v2086_v4 = vmax.f32 %v2073_v54, 0.0 }
 0x6be   : > { %v2077_v57 = vadd.f32 %v2076_v55, %v1978_v52  ;;  %v2173_v58 = vpop.f32.mrb[54].mxu1  ;;  %3169 = vmatprep.subr.bf16.mxu1 %v3168_v50  ;;  %v2078_v59 = vpop.f32.mrb[55].mxu0  ;;  %3163 = vmatpush1.bf16.msra.mxu0 %v3162_v42  ;;  %v2183_v8 = vmax.f32 %v2170_v56, 0.0 }
 0x6bf   : > { %v2174_v60 = vadd.f32 %v2173_v58, %v1978_v52  ;;  %v2079_v61 = vadd.f32 %v2078_v59, %v1978_v52  ;;  %v2175_v62 = vpop.f32.mrb[55].mxu1  ;;  %3171 = vmatpush1.bf16.msra.mxu1 %v3170_v47 }
 0x6c0   : > { %v2087_v1 = vmax.f32 %v2077_v57, 0.0  ;;  %v2176_v2 = vadd.f32 %v2175_v62, %v1978_v52  ;;  %v2214_v52 = vpop.permute.xlu1 %2213 }
 0x6c1   : > { %v2184_v5 = vmax.f32 %v2174_v60, 0.0  ;;  %v2088_v7 = vmax.f32 %v2079_v61, 0.0 }
 0x6c2   : > { %v3166_v6 = vpack.c.bf16 %v2087_v1, %v2085_v63  ;;  %v2185_v0 = vmax.f32 %v2176_v2, 0.0 }
 0x6c3   : > { %v3174_v10 = vpack.c.bf16 %v2184_v5, %v2182_v3  ;;  %v3164_v11 = vpack.c.bf16 %v2088_v7, %v2086_v4 }
 0x6c4   : > { %v3172_v12 = vpack.c.bf16 %v2185_v0, %v2183_v8 }
 0x6c5   : > { %3165 = vmatprep.subr.bf16.mxu0 %v3164_v11 }
 0x6c6   : > { %3173 = vmatprep.subr.bf16.mxu1 %v3172_v12  ;;  %3167 = vmatpush1.bf16.msra.mxu0 %v3166_v6 }
 0x6c7   : > { %3175 = vmatpush1.bf16.msra.mxu1 %v3174_v10 }
 0x6c9   : > { %2868 = vmatmul.mubr.msk.f32.vlgmr.msra.gmra.mrb[56].mxu0 %vm799_vm2, %v2860_v13 }
 0x6ca   : > { %2872 = vmatmul.mubr.msk.f32.vlgmr.msra.gmra.mrb[56].mxu1 %vm799_vm2, %v2860_v13  ;;  %2298 = vmatprep.mubr.f32.mxu0 %v3316_v9  ;;  %v2422_v13 = vld [vmem:[%s3938_s5] sm:$0xff] }
 0x6cb   : > { %2395 = vmatprep.mubr.f32.mxu1 %v3316_v9 }
 0x6cd   : > { %2869 = vmatmul.mubr.msk.f32.gmra.mrb[58].mxu0 %vm799_vm2, %v2861_v14 }
 0x6ce   : > { %2873 = vmatmul.mubr.msk.f32.gmra.mrb[58].mxu1 %vm799_vm2, %v2861_v14  ;;  %2304 = vmatprep.mubr.f32.mxu0 %v3316_v9  ;;  %v2427_v14 = vpop.permute.xlu0 %2426 }
 0x6cf   : > { %2401 = vmatprep.mubr.f32.mxu1 %v3316_v9 }
 0x6d1   : > { %2870 = vmatmul.mubr.msk.f32.gmra.mrb[60].mxu0 %vm799_vm2, %v2862_v15 }
 0x6d2   : > { %2874 = vmatmul.mubr.msk.f32.gmra.mrb[60].mxu1 %vm799_vm2, %v2862_v15  ;;  %2310 = vmatprep.mubr.f32.mxu0 %v3316_v9  ;;  %v2527_v15 = vpop.permute.xlu1 %2526 }
 0x6d3   : > { %2407 = vmatprep.mubr.f32.mxu1 %v3316_v9 }
 0x6d5   : > { %2871 = vmatmul.mubr.msk.f32.gmra.mrb[62].mxu0 %vm799_vm2, %v2863_v16 }
 0x6d6   : > { %2875 = vmatmul.mubr.msk.f32.gmra.mrb[62].mxu1 %vm799_vm2, %v2863_v16  ;;  %2496 = vmatprep.mubr.f32.mxu0 %v3316_v9 }
 0x6d7   : > { %2596 = vmatprep.mubr.f32.mxu1 %v3316_v9 }
 0x79c   : > { %v2294_v17 = vpop.f32.mrb[56].mxu0 }
 0x79d   : > { %v2391_v18 = vpop.f32.mrb[56].mxu1  ;;  %v2296_v19 = vpop.f32.mrb[57].mxu0  ;;  %v2295_v22 = vadd.f32 %v2294_v17, %v2199_v20 }
 0x79e   : > { %v2393_v21 = vpop.f32.mrb[57].mxu1  ;;  %v2392_v24 = vadd.f32 %v2391_v18, %v2199_v20  ;;  %v2297_v25 = vadd.f32 %v2296_v19, %v2199_v20 }
 0x79f   : > { %v2394_v27 = vadd.f32 %v2393_v21, %v2199_v20  ;;  %v2317_v34 = vmax.f32 %v2295_v22, 0.0 }
 0x7a0   : > { %v2300_v26 = vpop.f32.mrb[58].mxu0  ;;  %v2414_v36 = vmax.f32 %v2392_v24, 0.0  ;;  %v2318_v37 = vmax.f32 %v2297_v25, 0.0 }
 0x7a1   : > { %v2301_v28 = vadd.f32 %v2300_v26, %v2204_v23  ;;  %v2397_v29 = vpop.f32.mrb[58].mxu1  ;;  %v2302_v30 = vpop.f32.mrb[59].mxu0  ;;  %v2415_v41 = vmax.f32 %v2394_v27, 0.0 }
 0x7a2   : > { %v2398_v31 = vadd.f32 %v2397_v29, %v2204_v23  ;;  %v2303_v32 = vadd.f32 %v2302_v30, %v2204_v23  ;;  %v2399_v33 = vpop.f32.mrb[59].mxu1 }
 0x7a3   : > { %v2319_v35 = vmax.f32 %v2301_v28, 0.0  ;;  %v2400_v9 = vadd.f32 %v2399_v33, %v2204_v23 }
 0x7a4   : > { %v2416_v38 = vmax.f32 %v2398_v31, 0.0  ;;  %v2320_v39 = vmax.f32 %v2303_v32, 0.0  ;;  %v2306_v40 = vpop.f32.mrb[60].mxu0 }
 0x7a5   : > { %v3178_v42 = vpack.c.bf16 %v2319_v35, %v2317_v34  ;;  %v2417_v43 = vmax.f32 %v2400_v9, 0.0  ;;  %v2403_v44 = vpop.f32.mrb[60].mxu1  ;;  %v2308_v45 = vpop.f32.mrb[61].mxu0  ;;  %v2307_v51 = vadd.f32 %v2306_v40, %v2209_v46  ;;  %v2503_v34 = vlaneseq }
 0x7a6   : > { %v3186_v47 = vpack.c.bf16 %v2416_v38, %v2414_v36  ;;  %v3176_v48 = vpack.c.bf16 %v2320_v39, %v2318_v37  ;;  %v2405_v49 = vpop.f32.mrb[61].mxu1  ;;  %v2404_v53 = vadd.f32 %v2403_v44, %v2209_v46  ;;  %v2309_v54 = vadd.f32 %v2308_v45, %v2209_v46 }
 0x7a7   : > { %v3184_v50 = vpack.c.bf16 %v2417_v43, %v2415_v41  ;;  %v2406_v56 = vadd.f32 %v2405_v49, %v2209_v46  ;;  %v2321_v63 = vmax.f32 %v2307_v51, 0.0  ;;  %v2504_v36 = vshrl.u32 %v2503_v34, 7 }
 0x7a8   : > { %v2312_v55 = vpop.f32.mrb[62].mxu0  ;;  %3177 = vmatprep.subr.bf16.mxu0 %v3176_v48  ;;  %v2418_v3 = vmax.f32 %v2404_v53, 0.0  ;;  %v2322_v4 = vmax.f32 %v2309_v54, 0.0 }
 0x7a9   : > { %v2313_v57 = vadd.f32 %v2312_v55, %v2214_v52  ;;  %v2409_v58 = vpop.f32.mrb[62].mxu1  ;;  %3185 = vmatprep.subr.bf16.mxu1 %v3184_v50  ;;  %v2314_v59 = vpop.f32.mrb[63].mxu0  ;;  %3179 = vmatpush1.bf16.msra.mxu0 %v3178_v42  ;;  %v2419_v8 = vmax.f32 %v2406_v56, 0.0  ;;  %vm2505_vm3 = vcmp.lt.s32.totalorder %v2504_v36, 3 }
 0x7aa   : > { %v2410_v60 = vadd.f32 %v2409_v58, %v2214_v52  ;;  %v2315_v61 = vadd.f32 %v2314_v59, %v2214_v52  ;;  %v2411_v62 = vpop.f32.mrb[63].mxu1  ;;  %3187 = vmatpush1.bf16.msra.mxu1 %v3186_v47 }
 0x7ab   : > { %v2323_v1 = vmax.f32 %v2313_v57, 0.0  ;;  %v2412_v2 = vadd.f32 %v2411_v62, %v2214_v52 }
 0x7ac   : > { %v2420_v5 = vmax.f32 %v2410_v60, 0.0  ;;  %v2324_v7 = vmax.f32 %v2315_v61, 0.0 }
 0x7ad   : > { %v3182_v6 = vpack.c.bf16 %v2323_v1, %v2321_v63  ;;  %v2421_v0 = vmax.f32 %v2412_v2, 0.0 }
 0x7ae   : > { %v3190_v10 = vpack.c.bf16 %v2420_v5, %v2418_v3  ;;  %v3180_v11 = vpack.c.bf16 %v2324_v7, %v2322_v4 }
 0x7af   : > { %v3188_v12 = vpack.c.bf16 %v2421_v0, %v2419_v8 }
 0x7b0   : > { %3181 = vmatprep.subr.bf16.mxu0 %v3180_v11 }
 0x7b1   : > { %3189 = vmatprep.subr.bf16.mxu1 %v3188_v12  ;;  %3183 = vmatpush1.bf16.msra.mxu0 %v3182_v6 }
 0x7b2   : > { %3191 = vmatpush1.bf16.msra.mxu1 %v3190_v10 }
 0x7b4   : > { %2876 = vmatmul.mubr.msk.f32.vlgmr.msra.gmra.mrb[64].mxu0 %vm799_vm2, %v2422_v13 }
 0x7b5   : > { %2879 = vmatmul.mubr.msk.f32.vlgmr.msra.gmra.mrb[64].mxu1 %vm799_vm2, %v2422_v13 }
 0x887   : > { %v2498_v16 = vpop.f32.mrb[64].mxu0 }
 0x888   : > { %v2499_v17 = vadd.f32 %v2498_v16, %v2427_v14  ;;  %v2598_v18 = vpop.f32.mrb[64].mxu1  ;;  %v2500_v19 = vpop.f32.mrb[65].mxu0 }
 0x889   : > { %v2599_v20 = vadd.f32 %v2598_v18, %v2527_v15  ;;  %v2501_v21 = vadd.f32 %v2500_v19, %v2427_v14  ;;  %v2600_v22 = vpop.f32.mrb[65].mxu1 }
 0x88a   : > { %v2877_v23 = vmul.f32 -1.442695, %v2499_v17  ;;  %v2601_v24 = vadd.f32 %v2600_v22, %v2527_v15 }
 0x88b   : > { %v2880_v25 = vmul.f32 -1.442695, %v2599_v20  ;;  %v2878_v26 = vmul.f32 -1.442695, %v2501_v21 }
 0x88c   : > { %3235 = vpow2.f32 %v2877_v23  ;;  %v2881_v27 = vmul.f32 -1.442695, %v2601_v24 }
 0x88d   : > { %3237 = vpow2.f32 %v2880_v25 }
 0x88e   : > { %3239 = vpow2.f32 %v2878_v26 }
 0x88f   : > { %3241 = vpow2.f32 %v2881_v27 }
 0x896   : > { %v3236_v28 = vpop.eup %3235 }
 0x897   : > { %v3238_v29 = vpop.eup %3237  ;;  %v2512_v30 = vadd.f32 1.0, %v3236_v28 }
 0x898   : > { %v3240_v31 = vpop.eup %3239  ;;  %v2609_v32 = vadd.f32 1.0, %v3238_v29 }
 0x899   : > { %v3242_v33 = vpop.eup %3241  ;;  %3243 = vrcp.f32 %v2512_v30  ;;  %v2513_v35 = vadd.f32 1.0, %v3240_v31 }
 0x89a   : > { %3245 = vrcp.f32 %v2609_v32  ;;  %v2610_v9 = vadd.f32 1.0, %v3242_v33 }
 0x89b   : > { %3247 = vrcp.f32 %v2513_v35 }
 0x89c   : > { %3249 = vrcp.f32 %v2610_v9 }
 0x8a3   : > { %v3244_v37 = vpop.eup %3243 }
 0x8a4   : > { %v3246_v38 = vpop.eup %3245  ;;  %v2518_v39 = vsel %vm2505_vm3, %v3244_v37, %v2499_v17 }
 0x8a5   : > { %v3248_v40 = vpop.eup %3247  ;;  %2520 = vst [vmem:[%s272_s17] sm:$0xff] %v2518_v39  ;;  %v2615_v41 = vsel %vm2505_vm3, %v3246_v38, %v2599_v20 }
 0x8a6   : > { %v3250_v42 = vpop.eup %3249  ;;  %2617 = vst [vmem:[%s272_s17 + $0x10] sm:$0xff] %v2615_v41  ;;  %v2519_v43 = vsel %vm2505_vm3, %v3248_v40, %v2501_v21 }
 0x8a7   : > { %2521 = vst [vmem:[%s272_s17 + $0x8] sm:$0xff] %v2519_v43  ;;  %v2616_v44 = vsel %vm2505_vm3, %v3250_v42, %v2601_v24 }
 0x8a8   : > { %2618 = vst [vmem:[%s272_s17 + $0x18] sm:$0xff] %v2616_v44 }
 0x8a9   : > { %3264 = shalt.err (!%p3261_p3)
}
 0x8aa   : > { %s3265_s8 = scalar_lea.hbm %s3890_s20, 512  ;;  %s3269_s15 = scalar_lea.hbm %s3940_s7, 4096 }
 0x8ab   : > { %p3266_p4 = scmp.ne.s32.totalorder %s3890_s20, %s3265_s8  ;;  %p3270_p9 = scmp.lt.u32.totalorder %s3890_s20, %s3940_s7 }
 0x8ac   : > { %p3271_p10 = scmp.lt.u32.totalorder %s3269_s15, %s3265_s8  ;;  %p3273_p12 = scmp.lt.u32.totalorder %s3265_s8, %s3890_s20 }
 0x8ad   : > { %p3267_p7 = pnand %p3266_p4, %p3396_p5 }
 0x8ae   : > { %p3272_p11 = por %p3271_p10, %p3270_p9 }
 0x8af   : > { %p3268_p8 = pneg %p3267_p7 }
 0x8b0   : > { %p3274_p13 = por %p3273_p12, %p3272_p11 }
 0x8b2   : > { %p3275_p0 = pnand %p3274_p13, %p3268_p8 }
 0x8b4   : > { %3278 = shalt.err (!%p3275_p0)
}
 0x8b5   : > { %3192 = dma.vmem_to_hbm [thread:$0]  (%p3396_p5), %s3892_s18, 512, %s3890_s20, %s2620_s28  }
 0x8b6 PF: > { %p3198_p1 = scmp.ge.s32.totalorder %s3313_s27, 2  ;;  %s2646_s19 = sand.u32 1, %s3301_s24  }
 0x8b7   : > { %s2647_s14 = scalar_lea.sflag [#allocation3], %s2646_s19 }
 0x8b8   : > { %p3195_p2 = pnand %p3198_p1, %p3400_p6 }
 0x8ba   : > { %3296 = dma.done.wait (!%p3195_p2), %s2647_s14, 512  }
 0x8bb   : > { %3298 = vsyncadd (!%p3195_p2), %s2647_s14, 4294966784  ;;  %p17_p3 = scmp.ge.s32.totalorder %s3383_s30, 10   ;;  %s3945_s24 = smov %s3305_s25 }
 0x8bc   : > { %s3946_s25 = smov %s3309_s26  ;;  %s3947_s26 = smov %s3394_s10 }
 0x8bd   : > { %s3948_s27 = smov %s3383_s30  ;;  %19 = sbr.rel (!%p17_p3) target bundleno = 3 (0x3), region = 95 }
 0x8c4   :  { %2652 = vsyncpa [#allocation3], 1 }
 0x8c5   :  { %2654 = vsyncpa [#allocation3 + $0x1], 1 }

</bundles_post_ra>
